<compile_context>
chip_gen: v6e
topology: v6e:2x2x1
jax: 0.10.0
libtpu: 0.0.40
codegen_flags: <defaults>
</compile_context>

<pallas_src>
import math

import jax
import jax.numpy as jnp
from jax import lax
from jax.experimental import pallas as pl
from jax.experimental.pallas import tpu as pltpu


_INV_SQRT2 = 1.0 / math.sqrt(2.0)


def _gelu_exact(x):
    # erf-based GELU, matching torch.nn.GELU() default.
    return 0.5 * x * (1.0 + lax.erf(x * _INV_SQRT2))


def _circ_shift_rows(x, shift):
    """Static circular shift of a 2-D tile along axis 0 (jnp.roll semantics).
    Lowers to sublane rotates (XLU slot), which is idle relative to MXU/VPU
    here, so the in-kernel H wrap is essentially free."""
    n = x.shape[0]
    shift = shift % n
    if shift == 0:
        return x
    return jnp.concatenate([x[n - shift:, :], x[:n - shift, :]], axis=0)


# ----------------------------------------------------------------------------
# Fused whole-network kernel (one grid step == one image)
# ----------------------------------------------------------------------------
def _make_fused_kernel(n_convs, gelu_flags, residual_from):
    """Refs: (x_ref, w0, b0, w1, b1, ..., o_ref)

      x_ref : (1, H, W*chan)          lane-dense input activation
      w_l   : (3*W*chan, W*chan)      W-circulant expanded conv weight (3 H-taps)
      b_l   : (1, W*chan)             lane-dense bias
      o_ref : (1, H, W*chan)

    gelu_flags[l]    : apply GELU after conv l
    residual_from[l] : None, or index of an earlier layer output to add before
                       the GELU (ResBlock skip connection).
    """
    def kernel(*refs):
        x_ref, o_ref = refs[0], refs[-1]
        wb = refs[1:-1]

        act = x_ref[0]                                    # (H, W*chan), f32
        layer_out = []

        for l in range(n_convs):
            w_ref, b_ref = wb[2 * l], wb[2 * l + 1]

            # 3 circular H-taps (wrap done in-kernel), concatenated along lanes.
            up = _circ_shift_rows(act, 1)                 # row[h] = x[h-1]  (kh=0)
            dn = _circ_shift_rows(act, -1)                # row[h] = x[h+1]  (kh=2)
            patches = jnp.concatenate([up, act, dn], axis=1)  # (H, 3*W*chan)

            # One MXU matmul per conv layer (W-wrap is inside the weight).
            acc = jnp.dot(patches, w_ref[...],
                          preferred_element_type=jnp.float32)
            acc = acc + b_ref[...]                        # lane-dense bias

            r = residual_from[l]
            if r is not None:
                acc = acc + layer_out[r]                  # ResBlock skip
            if gelu_flags[l]:
                acc = _gelu_exact(acc)

            layer_out.append(acc)
            act = acc

        o_ref[0] = act.astype(o_ref.dtype)                # unmasked 128-lane store

    return kernel


# ----------------------------------------------------------------------------
# Parameters: canonical init + one-time lane-dense weight expansion (glue)
# ----------------------------------------------------------------------------
def init_params(key, input_dim, resblock_layers, resblock_channels,
                w_std=1e-3, b_std=0.0):
    """Conv params in (3, 3, Cin, Cout) layout (PyTorch stores (Cout, Cin, 3, 3)).
    Defaults mirror the module's init intent: weights ~ N(0, 0.001), biases = 0."""
    def conv_param(k, cin, cout):
        kw, kb = jax.random.split(k)
        w = w_std * jax.random.normal(kw, (3, 3, cin, cout), jnp.float32)
        b = b_std * jax.random.normal(kb, (cout,), jnp.float32)
        return w, b

    keys = jax.random.split(key, 2 + 2 * resblock_layers)
    params = {"in": conv_param(keys[0], input_dim, resblock_channels),
              "blocks": [],
              "out": conv_param(keys[-1], resblock_channels, input_dim)}
    for i in range(resblock_layers):
        params["blocks"].append(
            (conv_param(keys[1 + 2 * i], resblock_channels, resblock_channels),
             conv_param(keys[2 + 2 * i], resblock_channels, resblock_channels)))
    return params


def _expand_conv(w, b, img_w, chan):
    """(3,3,Cin,Cout) weight -> (3*W*chan, W*chan) matrix: for each of the 3
    H-taps, a banded circulant block kron(S_kw, w[kh,kw]) summed over kw, where
    S_kw is the W-circular shift matrix.  Lets the kernel compute each 3x3
    circular conv as a single lane-dense matmul (only the H-wrap stays
    in-kernel).  Bias becomes lane-dense (1, W*chan)."""
    _, _, cin, cout = w.shape
    if cin < chan:                       # zero-pad input channels (first layer)
        w = jnp.pad(w, ((0, 0), (0, 0), (0, chan - cin), (0, 0)))
    if cout < chan:                      # zero-pad output channels (last layer)
        w = jnp.pad(w, ((0, 0), (0, 0), (0, 0), (0, chan - cout)))
        b = jnp.pad(b, (0, chan - cout))

    eye = jnp.eye(img_w, dtype=w.dtype)
    blocks = []
    for kh in range(3):
        m = jnp.zeros((img_w * chan, img_w * chan), w.dtype)
        for kw in range(3):
            # S[w_in, w_out] = 1  iff  w_in == (w_out + kw - 1) mod W
            s = jnp.roll(eye, kw - 1, axis=0)
            m = m + jnp.kron(s, w[kh, kw])
        blocks.append(m)
    w_big = jnp.concatenate(blocks, axis=0)               # (3*W*chan, W*chan)
    b_big = jnp.tile(b, img_w).reshape(1, img_w * chan)   # lane-dense bias
    return w_big, b_big


def prepare_params(params, img_w):
    """Expand all conv weights for the fused kernel.  Call once (pure glue)."""
    chan = params["in"][0].shape[-1]                      # resblock_channels
    assert params["in"][0].shape[2] <= chan, "requires input_dim <= resblock_channels"
    layers = [params["in"]]
    for (c1, c2) in params["blocks"]:
        layers += [c1, c2]
    layers.append(params["out"])
    return [_expand_conv(w, b, img_w, chan) for (w, b) in layers]


# ----------------------------------------------------------------------------
# Fused forward pass (accepts / returns NCHW like the PyTorch module)
# ----------------------------------------------------------------------------
def simple_resnet_forward(prepared, x_nchw):
    """`prepared` = prepare_params(init_params(...), W)."""
    n, cin, h, w = x_nchw.shape
    chan = prepared[0][0].shape[1] // w                   # padded channel count
    n_convs = len(prepared)

    # boundary glue: NCHW -> lane-dense (N, H, W*chan), channels zero-padded
    x = jnp.transpose(x_nchw, (0, 2, 3, 1)).astype(jnp.float32)
    if cin < chan:
        x = jnp.pad(x, ((0, 0), (0, 0), (0, 0), (0, chan - cin)))
    x_flat = x.reshape(n, h, w * chan)

    gelu_flags = [True] * (n_convs - 1) + [False]
    residual_from = [None] * n_convs
    for l in range(2, n_convs - 1, 2):                    # conv2 of each ResBlock
        residual_from[l] = l - 2

    kernel = _make_fused_kernel(n_convs, tuple(gelu_flags), tuple(residual_from))

    in_specs = [pl.BlockSpec((1, h, w * chan), lambda i: (i, 0, 0))]
    args = [x_flat]
    for (w_big, b_big) in prepared:
        in_specs.append(pl.BlockSpec(w_big.shape, lambda i: (0, 0)))
        in_specs.append(pl.BlockSpec(b_big.shape, lambda i: (0, 0)))
        args += [w_big, b_big]

    out_flat = pl.pallas_call(
        kernel,
        out_shape=jax.ShapeDtypeStruct((n, h, w * chan), jnp.float32),
        grid_spec=pltpu.PrefetchScalarGridSpec(
            num_scalar_prefetch=0,
            grid=(n,),                                    # batch axis
            in_specs=in_specs,
            out_specs=pl.BlockSpec((1, h, w * chan), lambda i: (i, 0, 0)),
        ),
        compiler_params=pltpu.CompilerParams(
            dimension_semantics=("parallel",)),           # both TCs on v7x
    )(*args)

    # boundary glue: lane-dense -> NCHW, dropping the channel padding
    out = out_flat.reshape(n, h, w, chan)[..., :cin]
    return jnp.transpose(out, (0, 3, 1, 2))


# ----------------------------------------------------------------------------
# Pure-JAX reference (correctness check)
# ----------------------------------------------------------------------------
def _ref_conv(x_nchw, w_hwio, b, apply_gelu, residual=None):
    w_oihw = jnp.transpose(w_hwio, (3, 2, 0, 1))
    xp = jnp.pad(x_nchw, ((0, 0), (0, 0), (1, 1), (1, 1)), mode="wrap")
    y = lax.conv_general_dilated(xp, w_oihw, (1, 1), "VALID",
                                 dimension_numbers=("NCHW", "OIHW", "NCHW"),
                                 precision=lax.Precision.HIGHEST)
    y = y + b[None, :, None, None]
    if residual is not None:
        y = y + residual
    if apply_gelu:
        y = _gelu_exact(y)
    return y


def _ref_forward(params, x_nchw):
    w, b = params["in"]
    x = _ref_conv(x_nchw, w, b, True)
    for (w1, b1), (w2, b2) in params["blocks"]:
        r = x
        hid = _ref_conv(x, w1, b1, True)
        x = _ref_conv(hid, w2, b2, True, residual=r)
    w, b = params["out"]
    return _ref_conv(x, w, b, False)


# ----------------------------------------------------------------------------
if __name__ == "__main__":
    key = jax.random.PRNGKey(0)
    k_param, k_x, k_chk = jax.random.split(key, 3)

    # SimpleResnet(input_dim=4, resblock_layers=2, resblock_channels=8), 16x16.
    input_dim, resblock_layers, resblock_channels = 4, 2, 8
    batch, H, W = 2, 16, 16

    x = jax.random.normal(k_x, (batch, input_dim, H, W), jnp.float32)   # NCHW

    fwd = jax.jit(simple_resnet_forward)

    # Module-faithful run (weights ~ N(0, 0.001), zero biases).
    params = init_params(k_param, input_dim, resblock_layers, resblock_channels)
    prepared = prepare_params(params, W)
    out = jax.block_until_ready(fwd(prepared, x))
    assert out.shape == (batch, input_dim, H, W), out.shape

    # Numerically meaningful correctness check: larger random weights + biases so
    # the bias / residual / GELU / circular-wrap paths are genuinely exercised.
    chk = init_params(k_chk, input_dim, resblock_layers, resblock_channels,
                      w_std=0.1, b_std=0.1)
    out_k = jax.block_until_ready(fwd(prepare_params(chk, W), x))
    out_r = jax.block_until_ready(_ref_forward(chk, x))
    max_err = float(jnp.max(jnp.abs(out_k - out_r)))
    assert jnp.allclose(out_k, out_r, atol=2e-3, rtol=2e-3), max_err

    print("KERNEL_OK")
</pallas_src>

<mosaic_0001>
module attributes {stable_mosaic.version = 11 : i64} {
  func.func @kernel(%arg0: i32, %arg1: memref<1x16x128xf32, #tpu.memory_space<vmem>>, %arg2: memref<384x128xf32, #tpu.memory_space<vmem>>, %arg3: memref<1x128xf32, #tpu.memory_space<vmem>>, %arg4: memref<384x128xf32, #tpu.memory_space<vmem>>, %arg5: memref<1x128xf32, #tpu.memory_space<vmem>>, %arg6: memref<384x128xf32, #tpu.memory_space<vmem>>, %arg7: memref<1x128xf32, #tpu.memory_space<vmem>>, %arg8: memref<384x128xf32, #tpu.memory_space<vmem>>, %arg9: memref<1x128xf32, #tpu.memory_space<vmem>>, %arg10: memref<384x128xf32, #tpu.memory_space<vmem>>, %arg11: memref<1x128xf32, #tpu.memory_space<vmem>>, %arg12: memref<384x128xf32, #tpu.memory_space<vmem>>, %arg13: memref<1x128xf32, #tpu.memory_space<vmem>>, %arg14: memref<1x16x128xf32, #tpu.memory_space<vmem>>) attributes {dimension_semantics = [#tpu.dimension_semantics<parallel>], iteration_bounds = array<i64: 2>, scalar_prefetch = 0 : i64, scratch_operands = 0 : i64, tpu.core_type = #tpu.core_type<tc>, window_params = [{transform_indices = @transform_0, window_bounds = array<i64: 1, 16, 128>}, {pipeline_mode = #tpu.pipeline_mode<synchronous>, transform_indices = @transform_1, window_bounds = array<i64: 384, 128>}, {pipeline_mode = #tpu.pipeline_mode<synchronous>, transform_indices = @transform_2, window_bounds = array<i64: 1, 128>}, {pipeline_mode = #tpu.pipeline_mode<synchronous>, transform_indices = @transform_3, window_bounds = array<i64: 384, 128>}, {pipeline_mode = #tpu.pipeline_mode<synchronous>, transform_indices = @transform_4, window_bounds = array<i64: 1, 128>}, {pipeline_mode = #tpu.pipeline_mode<synchronous>, transform_indices = @transform_5, window_bounds = array<i64: 384, 128>}, {pipeline_mode = #tpu.pipeline_mode<synchronous>, transform_indices = @transform_6, window_bounds = array<i64: 1, 128>}, {pipeline_mode = #tpu.pipeline_mode<synchronous>, transform_indices = @transform_7, window_bounds = array<i64: 384, 128>}, {pipeline_mode = #tpu.pipeline_mode<synchronous>, transform_indices = @transform_8, window_bounds = array<i64: 1, 128>}, {pipeline_mode = #tpu.pipeline_mode<synchronous>, transform_indices = @transform_9, window_bounds = array<i64: 384, 128>}, {pipeline_mode = #tpu.pipeline_mode<synchronous>, transform_indices = @transform_10, window_bounds = array<i64: 1, 128>}, {pipeline_mode = #tpu.pipeline_mode<synchronous>, transform_indices = @transform_11, window_bounds = array<i64: 384, 128>}, {pipeline_mode = #tpu.pipeline_mode<synchronous>, transform_indices = @transform_12, window_bounds = array<i64: 1, 128>}, {transform_indices = @transform_13, window_bounds = array<i64: 1, 16, 128>}]} {
    %c0 = arith.constant 0 : index
    %c0_0 = arith.constant 0 : index
    %c0_1 = arith.constant 0 : index
    %0 = vector.load %arg1[%c0, %c0_0, %c0_1] : memref<1x16x128xf32, #tpu.memory_space<vmem>>, vector<1x16x128xf32>
    %1 = vector.shape_cast %0 : vector<1x16x128xf32> to vector<16x128xf32>
    %2 = vector.extract_strided_slice %1 {offsets = [15, 0], sizes = [1, 128], strides = [1, 1]} : vector<16x128xf32> to vector<1x128xf32>
    %3 = vector.extract_strided_slice %1 {offsets = [0, 0], sizes = [15, 128], strides = [1, 1]} : vector<16x128xf32> to vector<15x128xf32>
    %4 = tpu.concatenate %2, %3 in 0 : vector<1x128xf32>, vector<15x128xf32> -> vector<16x128xf32>
    %5 = vector.extract_strided_slice %1 {offsets = [1, 0], sizes = [15, 128], strides = [1, 1]} : vector<16x128xf32> to vector<15x128xf32>
    %6 = vector.extract_strided_slice %1 {offsets = [0, 0], sizes = [1, 128], strides = [1, 1]} : vector<16x128xf32> to vector<1x128xf32>
    %7 = tpu.concatenate %5, %6 in 0 : vector<15x128xf32>, vector<1x128xf32> -> vector<16x128xf32>
    %8 = tpu.concatenate %4, %1, %7 in 1 : vector<16x128xf32>, vector<16x128xf32>, vector<16x128xf32> -> vector<16x384xf32>
    %c0_2 = arith.constant 0 : index
    %c0_3 = arith.constant 0 : index
    %9 = vector.load %arg2[%c0_2, %c0_3] : memref<384x128xf32, #tpu.memory_space<vmem>>, vector<384x128xf32>
    %cst = arith.constant dense<0.000000e+00> : vector<16x128xf32>
    %10 = tpu.matmul %8, %9, %cst {dimension_numbers = #tpu.dot_dimension_numbers<[1], [0], [0], [1], [0, 0, 1, 1], [], []>} : vector<16x384xf32>, vector<384x128xf32>, vector<16x128xf32> -> vector<16x128xf32>
    %c0_4 = arith.constant 0 : index
    %c0_5 = arith.constant 0 : index
    %11 = vector.load %arg3[%c0_4, %c0_5] : memref<1x128xf32, #tpu.memory_space<vmem>>, vector<1x128xf32>
    %12 = vector.broadcast %11 : vector<1x128xf32> to vector<16x128xf32>
    %13 = arith.addf %10, %12 : vector<16x128xf32>
    %cst_6 = arith.constant 5.000000e-01 : f32
    %14 = vector.broadcast %cst_6 : f32 to vector<16x128xf32>
    %15 = arith.mulf %14, %13 : vector<16x128xf32>
    %cst_7 = arith.constant 0.707106769 : f32
    %16 = vector.broadcast %cst_7 : f32 to vector<16x128xf32>
    %17 = arith.mulf %13, %16 : vector<16x128xf32>
    %18 = math.erf %17 : vector<16x128xf32>
    %cst_8 = arith.constant 1.000000e+00 : f32
    %19 = vector.broadcast %cst_8 : f32 to vector<16x128xf32>
    %20 = arith.addf %19, %18 : vector<16x128xf32>
    %21 = arith.mulf %15, %20 : vector<16x128xf32>
    %22 = vector.extract_strided_slice %21 {offsets = [15, 0], sizes = [1, 128], strides = [1, 1]} : vector<16x128xf32> to vector<1x128xf32>
    %23 = vector.extract_strided_slice %21 {offsets = [0, 0], sizes = [15, 128], strides = [1, 1]} : vector<16x128xf32> to vector<15x128xf32>
    %24 = tpu.concatenate %22, %23 in 0 : vector<1x128xf32>, vector<15x128xf32> -> vector<16x128xf32>
    %25 = vector.extract_strided_slice %21 {offsets = [1, 0], sizes = [15, 128], strides = [1, 1]} : vector<16x128xf32> to vector<15x128xf32>
    %26 = vector.extract_strided_slice %21 {offsets = [0, 0], sizes = [1, 128], strides = [1, 1]} : vector<16x128xf32> to vector<1x128xf32>
    %27 = tpu.concatenate %25, %26 in 0 : vector<15x128xf32>, vector<1x128xf32> -> vector<16x128xf32>
    %28 = tpu.concatenate %24, %21, %27 in 1 : vector<16x128xf32>, vector<16x128xf32>, vector<16x128xf32> -> vector<16x384xf32>
    %c0_9 = arith.constant 0 : index
    %c0_10 = arith.constant 0 : index
    %29 = vector.load %arg4[%c0_9, %c0_10] : memref<384x128xf32, #tpu.memory_space<vmem>>, vector<384x128xf32>
    %cst_11 = arith.constant dense<0.000000e+00> : vector<16x128xf32>
    %30 = tpu.matmul %28, %29, %cst_11 {dimension_numbers = #tpu.dot_dimension_numbers<[1], [0], [0], [1], [0, 0, 1, 1], [], []>} : vector<16x384xf32>, vector<384x128xf32>, vector<16x128xf32> -> vector<16x128xf32>
    %c0_12 = arith.constant 0 : index
    %c0_13 = arith.constant 0 : index
    %31 = vector.load %arg5[%c0_12, %c0_13] : memref<1x128xf32, #tpu.memory_space<vmem>>, vector<1x128xf32>
    %32 = vector.broadcast %31 : vector<1x128xf32> to vector<16x128xf32>
    %33 = arith.addf %30, %32 : vector<16x128xf32>
    %cst_14 = arith.constant 5.000000e-01 : f32
    %34 = vector.broadcast %cst_14 : f32 to vector<16x128xf32>
    %35 = arith.mulf %34, %33 : vector<16x128xf32>
    %cst_15 = arith.constant 0.707106769 : f32
    %36 = vector.broadcast %cst_15 : f32 to vector<16x128xf32>
    %37 = arith.mulf %33, %36 : vector<16x128xf32>
    %38 = math.erf %37 : vector<16x128xf32>
    %cst_16 = arith.constant 1.000000e+00 : f32
    %39 = vector.broadcast %cst_16 : f32 to vector<16x128xf32>
    %40 = arith.addf %39, %38 : vector<16x128xf32>
    %41 = arith.mulf %35, %40 : vector<16x128xf32>
    %42 = vector.extract_strided_slice %41 {offsets = [15, 0], sizes = [1, 128], strides = [1, 1]} : vector<16x128xf32> to vector<1x128xf32>
    %43 = vector.extract_strided_slice %41 {offsets = [0, 0], sizes = [15, 128], strides = [1, 1]} : vector<16x128xf32> to vector<15x128xf32>
    %44 = tpu.concatenate %42, %43 in 0 : vector<1x128xf32>, vector<15x128xf32> -> vector<16x128xf32>
    %45 = vector.extract_strided_slice %41 {offsets = [1, 0], sizes = [15, 128], strides = [1, 1]} : vector<16x128xf32> to vector<15x128xf32>
    %46 = vector.extract_strided_slice %41 {offsets = [0, 0], sizes = [1, 128], strides = [1, 1]} : vector<16x128xf32> to vector<1x128xf32>
    %47 = tpu.concatenate %45, %46 in 0 : vector<15x128xf32>, vector<1x128xf32> -> vector<16x128xf32>
    %48 = tpu.concatenate %44, %41, %47 in 1 : vector<16x128xf32>, vector<16x128xf32>, vector<16x128xf32> -> vector<16x384xf32>
    %c0_17 = arith.constant 0 : index
    %c0_18 = arith.constant 0 : index
    %49 = vector.load %arg6[%c0_17, %c0_18] : memref<384x128xf32, #tpu.memory_space<vmem>>, vector<384x128xf32>
    %cst_19 = arith.constant dense<0.000000e+00> : vector<16x128xf32>
    %50 = tpu.matmul %48, %49, %cst_19 {dimension_numbers = #tpu.dot_dimension_numbers<[1], [0], [0], [1], [0, 0, 1, 1], [], []>} : vector<16x384xf32>, vector<384x128xf32>, vector<16x128xf32> -> vector<16x128xf32>
    %c0_20 = arith.constant 0 : index
    %c0_21 = arith.constant 0 : index
    %51 = vector.load %arg7[%c0_20, %c0_21] : memref<1x128xf32, #tpu.memory_space<vmem>>, vector<1x128xf32>
    %52 = vector.broadcast %51 : vector<1x128xf32> to vector<16x128xf32>
    %53 = arith.addf %50, %52 : vector<16x128xf32>
    %54 = arith.addf %53, %21 : vector<16x128xf32>
    %cst_22 = arith.constant 5.000000e-01 : f32
    %55 = vector.broadcast %cst_22 : f32 to vector<16x128xf32>
    %56 = arith.mulf %55, %54 : vector<16x128xf32>
    %cst_23 = arith.constant 0.707106769 : f32
    %57 = vector.broadcast %cst_23 : f32 to vector<16x128xf32>
    %58 = arith.mulf %54, %57 : vector<16x128xf32>
    %59 = math.erf %58 : vector<16x128xf32>
    %cst_24 = arith.constant 1.000000e+00 : f32
    %60 = vector.broadcast %cst_24 : f32 to vector<16x128xf32>
    %61 = arith.addf %60, %59 : vector<16x128xf32>
    %62 = arith.mulf %56, %61 : vector<16x128xf32>
    %63 = vector.extract_strided_slice %62 {offsets = [15, 0], sizes = [1, 128], strides = [1, 1]} : vector<16x128xf32> to vector<1x128xf32>
    %64 = vector.extract_strided_slice %62 {offsets = [0, 0], sizes = [15, 128], strides = [1, 1]} : vector<16x128xf32> to vector<15x128xf32>
    %65 = tpu.concatenate %63, %64 in 0 : vector<1x128xf32>, vector<15x128xf32> -> vector<16x128xf32>
    %66 = vector.extract_strided_slice %62 {offsets = [1, 0], sizes = [15, 128], strides = [1, 1]} : vector<16x128xf32> to vector<15x128xf32>
    %67 = vector.extract_strided_slice %62 {offsets = [0, 0], sizes = [1, 128], strides = [1, 1]} : vector<16x128xf32> to vector<1x128xf32>
    %68 = tpu.concatenate %66, %67 in 0 : vector<15x128xf32>, vector<1x128xf32> -> vector<16x128xf32>
    %69 = tpu.concatenate %65, %62, %68 in 1 : vector<16x128xf32>, vector<16x128xf32>, vector<16x128xf32> -> vector<16x384xf32>
    %c0_25 = arith.constant 0 : index
    %c0_26 = arith.constant 0 : index
    %70 = vector.load %arg8[%c0_25, %c0_26] : memref<384x128xf32, #tpu.memory_space<vmem>>, vector<384x128xf32>
    %cst_27 = arith.constant dense<0.000000e+00> : vector<16x128xf32>
    %71 = tpu.matmul %69, %70, %cst_27 {dimension_numbers = #tpu.dot_dimension_numbers<[1], [0], [0], [1], [0, 0, 1, 1], [], []>} : vector<16x384xf32>, vector<384x128xf32>, vector<16x128xf32> -> vector<16x128xf32>
    %c0_28 = arith.constant 0 : index
    %c0_29 = arith.constant 0 : index
    %72 = vector.load %arg9[%c0_28, %c0_29] : memref<1x128xf32, #tpu.memory_space<vmem>>, vector<1x128xf32>
    %73 = vector.broadcast %72 : vector<1x128xf32> to vector<16x128xf32>
    %74 = arith.addf %71, %73 : vector<16x128xf32>
    %cst_30 = arith.constant 5.000000e-01 : f32
    %75 = vector.broadcast %cst_30 : f32 to vector<16x128xf32>
    %76 = arith.mulf %75, %74 : vector<16x128xf32>
    %cst_31 = arith.constant 0.707106769 : f32
    %77 = vector.broadcast %cst_31 : f32 to vector<16x128xf32>
    %78 = arith.mulf %74, %77 : vector<16x128xf32>
    %79 = math.erf %78 : vector<16x128xf32>
    %cst_32 = arith.constant 1.000000e+00 : f32
    %80 = vector.broadcast %cst_32 : f32 to vector<16x128xf32>
    %81 = arith.addf %80, %79 : vector<16x128xf32>
    %82 = arith.mulf %76, %81 : vector<16x128xf32>
    %83 = vector.extract_strided_slice %82 {offsets = [15, 0], sizes = [1, 128], strides = [1, 1]} : vector<16x128xf32> to vector<1x128xf32>
    %84 = vector.extract_strided_slice %82 {offsets = [0, 0], sizes = [15, 128], strides = [1, 1]} : vector<16x128xf32> to vector<15x128xf32>
    %85 = tpu.concatenate %83, %84 in 0 : vector<1x128xf32>, vector<15x128xf32> -> vector<16x128xf32>
    %86 = vector.extract_strided_slice %82 {offsets = [1, 0], sizes = [15, 128], strides = [1, 1]} : vector<16x128xf32> to vector<15x128xf32>
    %87 = vector.extract_strided_slice %82 {offsets = [0, 0], sizes = [1, 128], strides = [1, 1]} : vector<16x128xf32> to vector<1x128xf32>
    %88 = tpu.concatenate %86, %87 in 0 : vector<15x128xf32>, vector<1x128xf32> -> vector<16x128xf32>
    %89 = tpu.concatenate %85, %82, %88 in 1 : vector<16x128xf32>, vector<16x128xf32>, vector<16x128xf32> -> vector<16x384xf32>
    %c0_33 = arith.constant 0 : index
    %c0_34 = arith.constant 0 : index
    %90 = vector.load %arg10[%c0_33, %c0_34] : memref<384x128xf32, #tpu.memory_space<vmem>>, vector<384x128xf32>
    %cst_35 = arith.constant dense<0.000000e+00> : vector<16x128xf32>
    %91 = tpu.matmul %89, %90, %cst_35 {dimension_numbers = #tpu.dot_dimension_numbers<[1], [0], [0], [1], [0, 0, 1, 1], [], []>} : vector<16x384xf32>, vector<384x128xf32>, vector<16x128xf32> -> vector<16x128xf32>
    %c0_36 = arith.constant 0 : index
    %c0_37 = arith.constant 0 : index
    %92 = vector.load %arg11[%c0_36, %c0_37] : memref<1x128xf32, #tpu.memory_space<vmem>>, vector<1x128xf32>
    %93 = vector.broadcast %92 : vector<1x128xf32> to vector<16x128xf32>
    %94 = arith.addf %91, %93 : vector<16x128xf32>
    %95 = arith.addf %94, %62 : vector<16x128xf32>
    %cst_38 = arith.constant 5.000000e-01 : f32
    %96 = vector.broadcast %cst_38 : f32 to vector<16x128xf32>
    %97 = arith.mulf %96, %95 : vector<16x128xf32>
    %cst_39 = arith.constant 0.707106769 : f32
    %98 = vector.broadcast %cst_39 : f32 to vector<16x128xf32>
    %99 = arith.mulf %95, %98 : vector<16x128xf32>
    %100 = math.erf %99 : vector<16x128xf32>
    %cst_40 = arith.constant 1.000000e+00 : f32
    %101 = vector.broadcast %cst_40 : f32 to vector<16x128xf32>
    %102 = arith.addf %101, %100 : vector<16x128xf32>
    %103 = arith.mulf %97, %102 : vector<16x128xf32>
    %104 = vector.extract_strided_slice %103 {offsets = [15, 0], sizes = [1, 128], strides = [1, 1]} : vector<16x128xf32> to vector<1x128xf32>
    %105 = vector.extract_strided_slice %103 {offsets = [0, 0], sizes = [15, 128], strides = [1, 1]} : vector<16x128xf32> to vector<15x128xf32>
    %106 = tpu.concatenate %104, %105 in 0 : vector<1x128xf32>, vector<15x128xf32> -> vector<16x128xf32>
    %107 = vector.extract_strided_slice %103 {offsets = [1, 0], sizes = [15, 128], strides = [1, 1]} : vector<16x128xf32> to vector<15x128xf32>
    %108 = vector.extract_strided_slice %103 {offsets = [0, 0], sizes = [1, 128], strides = [1, 1]} : vector<16x128xf32> to vector<1x128xf32>
    %109 = tpu.concatenate %107, %108 in 0 : vector<15x128xf32>, vector<1x128xf32> -> vector<16x128xf32>
    %110 = tpu.concatenate %106, %103, %109 in 1 : vector<16x128xf32>, vector<16x128xf32>, vector<16x128xf32> -> vector<16x384xf32>
    %c0_41 = arith.constant 0 : index
    %c0_42 = arith.constant 0 : index
    %111 = vector.load %arg12[%c0_41, %c0_42] : memref<384x128xf32, #tpu.memory_space<vmem>>, vector<384x128xf32>
    %cst_43 = arith.constant dense<0.000000e+00> : vector<16x128xf32>
    %112 = tpu.matmul %110, %111, %cst_43 {dimension_numbers = #tpu.dot_dimension_numbers<[1], [0], [0], [1], [0, 0, 1, 1], [], []>} : vector<16x384xf32>, vector<384x128xf32>, vector<16x128xf32> -> vector<16x128xf32>
    %c0_44 = arith.constant 0 : index
    %c0_45 = arith.constant 0 : index
    %113 = vector.load %arg13[%c0_44, %c0_45] : memref<1x128xf32, #tpu.memory_space<vmem>>, vector<1x128xf32>
    %114 = vector.broadcast %113 : vector<1x128xf32> to vector<16x128xf32>
    %115 = arith.addf %112, %114 : vector<16x128xf32>
    %c0_46 = arith.constant 0 : index
    %c0_47 = arith.constant 0 : index
    %c0_48 = arith.constant 0 : index
    %116 = vector.load %arg14[%c0_46, %c0_47, %c0_48] : memref<1x16x128xf32, #tpu.memory_space<vmem>>, vector<1x16x128xf32>
    %117 = vector.shape_cast %116 : vector<1x16x128xf32> to vector<16x128xf32>
    %118 = vector.shape_cast %115 : vector<16x128xf32> to vector<1x16x128xf32>
    tpu.vector_store %arg14[%c0_46, %c0_47, %c0_48], %118 {strides = array<i32>} : memref<1x16x128xf32, #tpu.memory_space<vmem>>, vector<1x16x128xf32>,
    return
  }
  func.func @transform_0(%arg0: i32) -> (i32, i32, i32) {
    %c0_i32 = arith.constant 0 : i32
    %c0_i32_0 = arith.constant 0 : i32
    %c0_i32_1 = arith.constant 0 : i32
    return %arg0, %c0_i32, %c0_i32_0 : i32, i32, i32
  }
  func.func @transform_1(%arg0: i32) -> (i32, i32) {
    %c0_i32 = arith.constant 0 : i32
    %c0_i32_0 = arith.constant 0 : i32
    %c0_i32_1 = arith.constant 0 : i32
    return %c0_i32, %c0_i32_0 : i32, i32
  }
  func.func @transform_2(%arg0: i32) -> (i32, i32) {
    %c0_i32 = arith.constant 0 : i32
    %c0_i32_0 = arith.constant 0 : i32
    %c0_i32_1 = arith.constant 0 : i32
    return %c0_i32, %c0_i32_0 : i32, i32
  }
  func.func @transform_3(%arg0: i32) -> (i32, i32) {
    %c0_i32 = arith.constant 0 : i32
    %c0_i32_0 = arith.constant 0 : i32
    %c0_i32_1 = arith.constant 0 : i32
    return %c0_i32, %c0_i32_0 : i32, i32
  }
  func.func @transform_4(%arg0: i32) -> (i32, i32) {
    %c0_i32 = arith.constant 0 : i32
    %c0_i32_0 = arith.constant 0 : i32
    %c0_i32_1 = arith.constant 0 : i32
    return %c0_i32, %c0_i32_0 : i32, i32
  }
  func.func @transform_5(%arg0: i32) -> (i32, i32) {
    %c0_i32 = arith.constant 0 : i32
    %c0_i32_0 = arith.constant 0 : i32
    %c0_i32_1 = arith.constant 0 : i32
    return %c0_i32, %c0_i32_0 : i32, i32
  }
  func.func @transform_6(%arg0: i32) -> (i32, i32) {
    %c0_i32 = arith.constant 0 : i32
    %c0_i32_0 = arith.constant 0 : i32
    %c0_i32_1 = arith.constant 0 : i32
    return %c0_i32, %c0_i32_0 : i32, i32
  }
  func.func @transform_7(%arg0: i32) -> (i32, i32) {
    %c0_i32 = arith.constant 0 : i32
    %c0_i32_0 = arith.constant 0 : i32
    %c0_i32_1 = arith.constant 0 : i32
    return %c0_i32, %c0_i32_0 : i32, i32
  }
  func.func @transform_8(%arg0: i32) -> (i32, i32) {
    %c0_i32 = arith.constant 0 : i32
    %c0_i32_0 = arith.constant 0 : i32
    %c0_i32_1 = arith.constant 0 : i32
    return %c0_i32, %c0_i32_0 : i32, i32
  }
  func.func @transform_9(%arg0: i32) -> (i32, i32) {
    %c0_i32 = arith.constant 0 : i32
    %c0_i32_0 = arith.constant 0 : i32
    %c0_i32_1 = arith.constant 0 : i32
    return %c0_i32, %c0_i32_0 : i32, i32
  }
  func.func @transform_10(%arg0: i32) -> (i32, i32) {
    %c0_i32 = arith.constant 0 : i32
    %c0_i32_0 = arith.constant 0 : i32
    %c0_i32_1 = arith.constant 0 : i32
    return %c0_i32, %c0_i32_0 : i32, i32
  }
  func.func @transform_11(%arg0: i32) -> (i32, i32) {
    %c0_i32 = arith.constant 0 : i32
    %c0_i32_0 = arith.constant 0 : i32
    %c0_i32_1 = arith.constant 0 : i32
    return %c0_i32, %c0_i32_0 : i32, i32
  }
  func.func @transform_12(%arg0: i32) -> (i32, i32) {
    %c0_i32 = arith.constant 0 : i32
    %c0_i32_0 = arith.constant 0 : i32
    %c0_i32_1 = arith.constant 0 : i32
    return %c0_i32, %c0_i32_0 : i32, i32
  }
  func.func @transform_13(%arg0: i32) -> (i32, i32, i32) {
    %c0_i32 = arith.constant 0 : i32
    %c0_i32_0 = arith.constant 0 : i32
    %c0_i32_1 = arith.constant 0 : i32
    return %arg0, %c0_i32, %c0_i32_0 : i32, i32, i32
  }
}

</mosaic_0001>

<bundles_post_ra>
// kernel: simple_resnet_forward.1
= control target key start
LH: loop header
LB: loop body
LE: loop exit
PB: predicated region body
PF: predicated region fallthrough
CT: control target
= control target key end

     0   :  { %18 = vsyncpa [#allocation3], 0  ;;  %s3300_s0 = inlined_call_operand.vmem [shape: f32[2,16,128], index: 0, kind: input, shape index: {}]   ;;  %s3301_s1 = inlined_call_operand.vmem [shape: f32[384,128], index: 1, kind: input, shape index: {}]   ;;  %s3302_s2 = inlined_call_operand.vmem [shape: f32[1,128], index: 2, kind: input, shape index: {}]   ;;  %s3303_s3 = inlined_call_operand.vmem [shape: f32[384,128], index: 3, kind: input, shape index: {}]   ;;  %s3304_s4 = inlined_call_operand.vmem [shape: f32[1,128], index: 4, kind: input, shape index: {}]   ;;  %s3305_s5 = inlined_call_operand.hbm [shape: f32[384,128], index: 5, kind: input, shape index: {}]   ;;  %s3306_s6 = inlined_call_operand.vmem [shape: f32[1,128], index: 6, kind: input, shape index: {}]   ;;  %s3307_s7 = inlined_call_operand.hbm [shape: f32[384,128], index: 7, kind: input, shape index: {}]   ;;  %s3308_s8 = inlined_call_operand.vmem [shape: f32[1,128], index: 8, kind: input, shape index: {}]   ;;  %s3309_s9 = inlined_call_operand.hbm [shape: f32[384,128], index: 9, kind: input, shape index: {}]   ;;  %s3310_s10 = inlined_call_operand.vmem [shape: f32[1,128], index: 10, kind: input, shape index: {}]   ;;  %s3311_s11 = inlined_call_operand.hbm [shape: f32[384,128], index: 11, kind: input, shape index: {}]   ;;  %s3312_s12 = inlined_call_operand.vmem [shape: f32[1,128], index: 12, kind: input, shape index: {}]   ;;  %s3313_s13 = inlined_call_operand.vmem [shape: f32[2,16,128], index: 13, kind: output, shape index: {}]  }
   0x1   :  { %19 = vsyncpa [#allocation5], 0 }
   0x2   :  { %20 = vsyncpa [#allocation8], 0  ;;  %s2826_s25 = smov 0  }
   0x3 LB: > { %s2832_s26 = sadd.s32 4294967295, %s2748_s25   ;;  %p1984_p0 = scmp.ge.s32.totalorder %s2748_s25, 1  ;;  %s2748_s25 = sphi %s2826_s25, %s26_s25  }
   0x4   : > { %p335_p1 = scmp.lt.s32.totalorder %s2748_s25, 3  ;;  %p2584_p2 = scmp.eq.s32.totalorder %s2832_s26, 0 }
   0x5   : > { %s2750_s28 = smov [#allocation4]   ;;  %s2751_s30 = smov [#allocation2]  }
   0x6   : > { %p2837_p3 = pnand %p1984_p0, %p335_p1  ;;  %s375_s29 = sshll.u32 %s2750_s28, 4  ;;  %s376_s29 = int_to_ptr.vmem [resolvable:$true] %s375_s29 }
   0x7   : > { %s359_s14 = sshll.u32 %s2751_s30, 4  ;;  %s2752_s16 = smov [#allocation6]   ;;  %s2843_s14 = int_to_ptr.vmem [resolvable:$true] %s359_s14 }
   0x8   : > { %p2571_p4 = pneg %p2837_p3  ;;  %s391_s17 = sshll.u32 %s2752_s16, 4  ;;  %s2851_s17 = int_to_ptr.vmem [resolvable:$true] %s391_s17 }
   0x9   : > { %s2753_s18 = smov [#allocation7]   ;;  %s2637_s20 = scalar_lea.vmem %s376_s29, 6144 }
   0xa   : > { %p2847_p5 = pnand %p2584_p2, %p2571_p4  ;;  %s2853_s19 = sshll.u32 %s2753_s18, 4  ;;  %s408_s19 = int_to_ptr.vmem [resolvable:$true] %s2853_s19 }
   0xb   : > { %p2638_p7 = scmp.ne.s32.totalorder %s376_s29, %s2637_s20  ;;  %p2645_p10 = scmp.lt.s32.totalorder %s376_s29, %s376_s29 }
   0xc   : > { %p2628_p6 = pneg %p2847_p5  ;;  %p2646_p11 = scmp.lt.s32.totalorder %s2637_s20, %s2637_s20 }
   0xe   : > { %p2640_p8 = pnand %p2638_p7, %p2628_p6  ;;  %p2647_p12 = por %p2646_p11, %p2645_p10 }
  0x10   : > { %p2641_p9 = pneg %p2640_p8 }
  0x12   : > { %p2648_p13 = pnand %p2647_p12, %p2641_p9 }
  0x14   : > { %2651 = shalt.err (!%p2648_p13)
}
  0x15   : > { %s2754_s21 = smov 128   ;;  %s2755_s22 = smov 8  }
  0x16   : > { %2577 = dma.hbm_to_vmem [thread:$0]  (!%p2847_p5), %s3307_s7, 6144, %s376_s29, [#allocation5], %s2754_s21, %s2754_s21, %s2755_s22  }
  0x17   : > { %s2663_s28 = scalar_lea.vmem %s2843_s14, 6144  ;;  %p2671_p7 = scmp.lt.s32.totalorder %s2843_s14, %s2843_s14 }
  0x18   : > { %p2664_p0 = scmp.ne.s32.totalorder %s2843_s14, %s2663_s28  ;;  %p2672_p8 = scmp.lt.s32.totalorder %s2663_s28, %s2663_s28 }
  0x1a   : > { %p2666_p1 = pnand %p2664_p0, %p2628_p6  ;;  %p2673_p9 = por %p2672_p8, %p2671_p7 }
  0x1c   : > { %p2667_p4 = pneg %p2666_p1 }
  0x1e   : > { %p2674_p10 = pnand %p2673_p9, %p2667_p4 }
  0x20   : > { %2677 = shalt.err (!%p2674_p10)
}
  0x21   : > { %2574 = dma.hbm_to_vmem [thread:$0]  (!%p2847_p5), %s3305_s5, 6144, %s2843_s14, [#allocation3], %s2754_s21, %s2754_s21, %s2755_s22  }
  0x22   : > { %s2689_s16 = scalar_lea.vmem %s2851_s17, 6144  ;;  %p2697_p0 = scmp.lt.s32.totalorder %s2851_s17, %s2851_s17 }
  0x23   : > { %p2690_p11 = scmp.ne.s32.totalorder %s2851_s17, %s2689_s16  ;;  %p2698_p1 = scmp.lt.s32.totalorder %s2689_s16, %s2689_s16 }
  0x25   : > { %p2692_p12 = pnand %p2690_p11, %p2628_p6  ;;  %p2699_p4 = por %p2698_p1, %p2697_p0 }
  0x27   : > { %p2693_p13 = pneg %p2692_p12 }
  0x29   : > { %p2700_p7 = pnand %p2699_p4, %p2693_p13 }
  0x2b   : > { %2703 = shalt.err (!%p2700_p7)
}
  0x2c   : > { %2580 = dma.hbm_to_vmem [thread:$0]  (!%p2847_p5), %s3309_s9, 6144, %s2851_s17, [#allocation5], %s2754_s21, %s2754_s21, %s2755_s22  }
  0x2d   : > { %s2715_s20 = scalar_lea.vmem %s408_s19, 6144  ;;  %p2723_p11 = scmp.lt.s32.totalorder %s408_s19, %s408_s19 }
  0x2e   : > { %p2716_p8 = scmp.ne.s32.totalorder %s408_s19, %s2715_s20  ;;  %p2724_p12 = scmp.lt.s32.totalorder %s2715_s20, %s2715_s20 }
  0x30   : > { %p2718_p9 = pnand %p2716_p8, %p2628_p6  ;;  %p2725_p13 = por %p2724_p12, %p2723_p11 }
  0x32   : > { %p2719_p10 = pneg %p2718_p9 }
  0x34   : > { %p2726_p0 = pnand %p2725_p13, %p2719_p10 }
  0x36   : > { %2729 = shalt.err (!%p2726_p0)
}
  0x37   : > { %2583 = dma.hbm_to_vmem [thread:$0]  (!%p2847_p5), %s3311_s11, 6144, %s408_s19, [#allocation8], %s2754_s21, %s2754_s21, %s2755_s22  }
  0x38   : > { %434 = sbr.rel (%p2837_p3) target bundleno = 1449 (0x5a9), region = 72 }
  0x3d   : > { %2735 = dma.done.wait (%p2584_p2), [#allocation3], 6144  }
  0x3e   : > { %2737 = vsyncadd (%p2584_p2), [#allocation3], 4294961152 }
  0x3f   : > { %2739 = dma.done.wait (%p2584_p2), [#allocation5], 12288  }
  0x40   : > { %2741 = vsyncadd (%p2584_p2), [#allocation5], 4294955008 }
  0x41   : > { %2743 = dma.done.wait (%p2584_p2), [#allocation8], 6144  }
  0x42   : > { %2745 = vsyncadd (%p2584_p2), [#allocation8], 4294961152  ;;  %v551_v0 = vld [vmem:[%s3301_s1 + $0xf8] sm:$0xff]  ;;  %v550_v2 = vld [vmem:[%s3301_s1 + $0xf0] sm:$0xff]  ;;  %p490_p2 = scmp.lt.s32.totalorder %s2832_s26, 1  ;;  %vm506_vm0 = vcmask 1040384  }
  0x43   : > { %v535_v1 = vld [vmem:[%s3301_s1 + $0x78] sm:$0xff]  ;;  %2009 = vmatprep.subr.mxu0 %v551_v0  ;;  %v534_v3 = vld [vmem:[%s3301_s1 + $0x70] sm:$0xff]  ;;  %v549_v5 = vld [vmem:[%s3301_s1 + $0xe8] sm:$0xff]  ;;  %vm512_vm1 = vcmask 1046528  }
  0x44   : > { %v567_v4 = vld [vmem:[%s3301_s1 + $0x178] sm:$0xff]  ;;  %2010 = vmatpush3.msra.mxu0 %v535_v1  ;;  %v566_v6 = vld [vmem:[%s3301_s1 + $0x170] sm:$0xff]  ;;  %v533_v7 = vld [vmem:[%s3301_s1 + $0x68] sm:$0xff]  ;;  %s3317_s26 = smov (!%p490_p2, %s2832_s26), 1 }
  0x45   : > { %2345 = vmatprep.subr.mxu1 %v567_v4  ;;  %2011 = vmatprep.subr.mxu0 %v550_v2  ;;  %v565_v8 = vld [vmem:[%s3301_s1 + $0x168] sm:$0xff]  ;;  %v548_v9 = vld [vmem:[%s3301_s1 + $0xe0] sm:$0xff]  ;;  %v547_v12 = vld [vmem:[%s3301_s1 + $0xd8] sm:$0xff]  ;;  %s2007_s27 = sshll.u32 %s3317_s26, 4 }
  0x46   : > { %2346 = vmatpush3.msra.mxu1 %v567_v4  ;;  %2012 = vmatpush3.msra.mxu0 %v534_v3  ;;  %v532_v10 = vld [vmem:[%s3301_s1 + $0x60] sm:$0xff]  ;;  %v531_v13 = vld [vmem:[%s3301_s1 + $0x58] sm:$0xff]  ;;  %v546_v15 = vld [vmem:[%s3301_s1 + $0xd0] sm:$0xff]  ;;  %s494_s14 = scalar_lea.vmem %s3300_s0, %s2007_s27  ;;  %s499_s18 = scalar_lea.vmem %s3313_s13, %s2007_s27 }
  0x47   : > { %2347 = vmatprep.subr.mxu1 %v566_v6  ;;  %2013 = vmatprep.subr.mxu0 %v549_v5  ;;  %v564_v11 = vld [vmem:[%s3301_s1 + $0x160] sm:$0xff]  ;;  %v563_v14 = vld [vmem:[%s3301_s1 + $0x158] sm:$0xff]  ;;  %v530_v16 = vld [vmem:[%s3301_s1 + $0x50] sm:$0xff] }
  0x48   : > { %2348 = vmatpush3.msra.mxu1 %v566_v6  ;;  %2014 = vmatpush3.msra.mxu0 %v533_v7  ;;  %v562_v17 = vld [vmem:[%s3301_s1 + $0x150] sm:$0xff]  ;;  %v545_v18 = vld [vmem:[%s3301_s1 + $0xc8] sm:$0xff]  ;;  %v544_v21 = vld [vmem:[%s3301_s1 + $0xc0] sm:$0xff] }
  0x49   : > { %2349 = vmatprep.subr.mxu1 %v565_v8  ;;  %2015 = vmatprep.subr.mxu0 %v548_v9  ;;  %v529_v19 = vld [vmem:[%s3301_s1 + $0x48] sm:$0xff]  ;;  %v528_v22 = vld [vmem:[%s3301_s1 + $0x40] sm:$0xff]  ;;  %v543_v24 = vld [vmem:[%s3301_s1 + $0xb8] sm:$0xff] }
  0x4a   : > { %2350 = vmatpush3.msra.mxu1 %v565_v8  ;;  %2016 = vmatpush3.msra.mxu0 %v532_v10  ;;  %v561_v20 = vld [vmem:[%s3301_s1 + $0x148] sm:$0xff]  ;;  %v560_v23 = vld [vmem:[%s3301_s1 + $0x140] sm:$0xff]  ;;  %v527_v25 = vld [vmem:[%s3301_s1 + $0x38] sm:$0xff] }
  0x4b   : > { %2351 = vmatprep.subr.mxu1 %v564_v11  ;;  %2017 = vmatprep.subr.mxu0 %v547_v12  ;;  %v559_v26 = vld [vmem:[%s3301_s1 + $0x138] sm:$0xff]  ;;  %v542_v27 = vld [vmem:[%s3301_s1 + $0xb0] sm:$0xff]  ;;  %v541_v30 = vld [vmem:[%s3301_s1 + $0xa8] sm:$0xff] }
  0x4c   : > { %2352 = vmatpush3.msra.mxu1 %v564_v11  ;;  %2018 = vmatpush3.msra.mxu0 %v531_v13  ;;  %v526_v28 = vld [vmem:[%s3301_s1 + $0x30] sm:$0xff]  ;;  %v525_v31 = vld [vmem:[%s3301_s1 + $0x28] sm:$0xff]  ;;  %v540_v33 = vld [vmem:[%s3301_s1 + $0xa0] sm:$0xff] }
  0x4d   : > { %2353 = vmatprep.subr.mxu1 %v563_v14  ;;  %2019 = vmatprep.subr.mxu0 %v546_v15  ;;  %v558_v29 = vld [vmem:[%s3301_s1 + $0x130] sm:$0xff]  ;;  %v557_v32 = vld [vmem:[%s3301_s1 + $0x128] sm:$0xff]  ;;  %v524_v34 = vld [vmem:[%s3301_s1 + $0x20] sm:$0xff] }
  0x4e   : > { %2354 = vmatpush3.msra.mxu1 %v563_v14  ;;  %2020 = vmatpush3.msra.mxu0 %v530_v16  ;;  %v556_v35 = vld [vmem:[%s3301_s1 + $0x120] sm:$0xff]  ;;  %v539_v36 = vld [vmem:[%s3301_s1 + $0x98] sm:$0xff]  ;;  %v501_v40 = vld [vmem:[%s494_s14 + $0x8] sm:$0xff] }
  0x4f   : > { %2355 = vmatprep.subr.mxu1 %v562_v17  ;;  %2021 = vmatprep.subr.mxu0 %v545_v18  ;;  %v523_v37 = vld [vmem:[%s3301_s1 + $0x18] sm:$0xff]  ;;  %v500_v39 = vld [vmem:[%s494_s14] sm:$0xff]  ;;  %v538_v41 = vld [vmem:[%s3301_s1 + $0x90] sm:$0xff]  ;;  %v503_v45 = vrot.slane %v501_v40, 7  ;;  %v514_v51 = vrot.slane %v501_v40, 1 }
  0x50   : > { %2356 = vmatpush3.msra.mxu1 %v562_v17  ;;  %2022 = vmatpush3.msra.mxu0 %v529_v19  ;;  %v555_v38 = vld [vmem:[%s3301_s1 + $0x118] sm:$0xff]  ;;  %v522_v42 = vld [vmem:[%s3301_s1 + $0x10] sm:$0xff]  ;;  %v537_v44 = vld [vmem:[%s3301_s1 + $0x88] sm:$0xff]  ;;  %v507_v46 = vrot.slane %v500_v39, 7  ;;  %v513_v49 = vrot.slane %v500_v39, 1 }
  0x51   : > { %2357 = vmatprep.subr.mxu1 %v561_v20  ;;  %2023 = vmatprep.subr.mxu0 %v544_v21  ;;  %v554_v43 = vld [vmem:[%s3301_s1 + $0x110] sm:$0xff]  ;;  %v521_v47 = vld [vmem:[%s3301_s1 + $0x8] sm:$0xff]  ;;  %v536_v48 = vld [vmem:[%s3301_s1 + $0x80] sm:$0xff] }
  0x52   : > { %2358 = vmatpush3.msra.mxu1 %v561_v20  ;;  %2024 = vmatpush3.msra.mxu0 %v528_v22  ;;  %v553_v50 = vld [vmem:[%s3301_s1 + $0x108] sm:$0xff]  ;;  %v520_v52 = vld [vmem:[%s3301_s1] sm:$0xff]  ;;  %v511_v53 = vsel %vm506_vm0, %v503_v45, %v507_v46  ;;  %v515_v55 = vsel %vm512_vm1, %v513_v49, %v514_v51  ;;  %v519_v56 = vsel %vm512_vm1, %v514_v51, %v513_v49  ;;  %v782_v58 = vld [vmem:[%s3303_s3 + $0xf8] sm:$0xff] }
  0x53   : > { %2359 = vmatprep.subr.mxu1 %v560_v23  ;;  %2025 = vmatprep.subr.mxu0 %v543_v24  ;;  %v552_v54 = vld [vmem:[%s3301_s1 + $0x100] sm:$0xff]  ;;  %v508_v57 = vsel %vm506_vm0, %v507_v46, %v503_v45  ;;  %v766_v59 = vld [vmem:[%s3303_s3 + $0x78] sm:$0xff]  ;;  %v781_v61 = vld [vmem:[%s3303_s3 + $0xf0] sm:$0xff] }
  0x54   : > { %2360 = vmatpush3.msra.mxu1 %v560_v23  ;;  %2026 = vmatpush3.msra.mxu0 %v527_v25  ;;  %v798_v60 = vld [vmem:[%s3303_s3 + $0x178] sm:$0xff]  ;;  %v765_v62 = vld [vmem:[%s3303_s3 + $0x70] sm:$0xff]  ;;  %v780_v0 = vld [vmem:[%s3303_s3 + $0xe8] sm:$0xff] }
  0x55   : > { %2361 = vmatprep.subr.mxu1 %v559_v26  ;;  %2027 = vmatprep.subr.mxu0 %v542_v27  ;;  %v797_v63 = vld [vmem:[%s3303_s3 + $0x170] sm:$0xff]  ;;  %v764_v1 = vld [vmem:[%s3303_s3 + $0x68] sm:$0xff]  ;;  %v779_v3 = vld [vmem:[%s3303_s3 + $0xe0] sm:$0xff] }
  0x56   : > { %2362 = vmatpush3.msra.mxu1 %v559_v26  ;;  %2028 = vmatpush3.msra.mxu0 %v526_v28  ;;  %v796_v2 = vld [vmem:[%s3303_s3 + $0x168] sm:$0xff]  ;;  %v763_v4 = vld [vmem:[%s3303_s3 + $0x60] sm:$0xff]  ;;  %v778_v6 = vld [vmem:[%s3303_s3 + $0xd8] sm:$0xff] }
  0x57   : > { %2363 = vmatprep.subr.mxu1 %v558_v29  ;;  %2029 = vmatprep.subr.mxu0 %v541_v30  ;;  %v795_v5 = vld [vmem:[%s3303_s3 + $0x160] sm:$0xff]  ;;  %v762_v7 = vld [vmem:[%s3303_s3 + $0x58] sm:$0xff]  ;;  %v777_v9 = vld [vmem:[%s3303_s3 + $0xd0] sm:$0xff] }
  0x58   : > { %2364 = vmatpush3.msra.mxu1 %v558_v29  ;;  %2030 = vmatpush3.msra.mxu0 %v525_v31  ;;  %v794_v8 = vld [vmem:[%s3303_s3 + $0x158] sm:$0xff]  ;;  %v761_v10 = vld [vmem:[%s3303_s3 + $0x50] sm:$0xff]  ;;  %v776_v12 = vld [vmem:[%s3303_s3 + $0xc8] sm:$0xff] }
  0x59   : > { %2365 = vmatprep.subr.mxu1 %v557_v32  ;;  %2031 = vmatprep.subr.mxu0 %v540_v33  ;;  %v793_v11 = vld [vmem:[%s3303_s3 + $0x150] sm:$0xff]  ;;  %v760_v13 = vld [vmem:[%s3303_s3 + $0x48] sm:$0xff]  ;;  %v775_v15 = vld [vmem:[%s3303_s3 + $0xc0] sm:$0xff] }
  0x5a   : > { %2366 = vmatpush3.msra.mxu1 %v557_v32  ;;  %2032 = vmatpush3.msra.mxu0 %v524_v34  ;;  %v792_v14 = vld [vmem:[%s3303_s3 + $0x148] sm:$0xff]  ;;  %v759_v16 = vld [vmem:[%s3303_s3 + $0x40] sm:$0xff]  ;;  %v774_v18 = vld [vmem:[%s3303_s3 + $0xb8] sm:$0xff] }
  0x5b   : > { %2367 = vmatprep.subr.mxu1 %v556_v35  ;;  %2033 = vmatprep.subr.mxu0 %v539_v36  ;;  %v791_v17 = vld [vmem:[%s3303_s3 + $0x140] sm:$0xff]  ;;  %v758_v19 = vld [vmem:[%s3303_s3 + $0x38] sm:$0xff]  ;;  %v773_v21 = vld [vmem:[%s3303_s3 + $0xb0] sm:$0xff] }
  0x5c   : > { %2368 = vmatpush3.msra.mxu1 %v556_v35  ;;  %2034 = vmatpush3.msra.mxu0 %v523_v37  ;;  %v790_v20 = vld [vmem:[%s3303_s3 + $0x138] sm:$0xff]  ;;  %v757_v22 = vld [vmem:[%s3303_s3 + $0x30] sm:$0xff]  ;;  %v772_v24 = vld [vmem:[%s3303_s3 + $0xa8] sm:$0xff] }
  0x5d   : > { %2369 = vmatprep.subr.mxu1 %v555_v38  ;;  %2035 = vmatprep.subr.mxu0 %v538_v41  ;;  %v789_v23 = vld [vmem:[%s3303_s3 + $0x130] sm:$0xff]  ;;  %v756_v25 = vld [vmem:[%s3303_s3 + $0x28] sm:$0xff]  ;;  %v771_v27 = vld [vmem:[%s3303_s3 + $0xa0] sm:$0xff] }
  0x5e   : > { %2370 = vmatpush3.msra.mxu1 %v555_v38  ;;  %2036 = vmatpush3.msra.mxu0 %v522_v42  ;;  %v788_v26 = vld [vmem:[%s3303_s3 + $0x128] sm:$0xff]  ;;  %v755_v28 = vld [vmem:[%s3303_s3 + $0x20] sm:$0xff]  ;;  %v770_v30 = vld [vmem:[%s3303_s3 + $0x98] sm:$0xff] }
  0x5f   : > { %2371 = vmatprep.subr.mxu1 %v554_v43  ;;  %2037 = vmatprep.subr.mxu0 %v537_v44  ;;  %v787_v29 = vld [vmem:[%s3303_s3 + $0x120] sm:$0xff]  ;;  %v754_v31 = vld [vmem:[%s3303_s3 + $0x18] sm:$0xff]  ;;  %v769_v33 = vld [vmem:[%s3303_s3 + $0x90] sm:$0xff] }
  0x60   : > { %639 = vmatprep.mubr.f32.mxu0 %v500_v39  ;;  %2038 = vmatpush3.msra.mxu0 %v521_v47  ;;  %v786_v32 = vld [vmem:[%s3303_s3 + $0x118] sm:$0xff]  ;;  %v753_v34 = vld [vmem:[%s3303_s3 + $0x10] sm:$0xff]  ;;  %v768_v36 = vld [vmem:[%s3303_s3 + $0x88] sm:$0xff] }
  0x61   : > { %2372 = vmatpush3.msra.mxu1 %v554_v43  ;;  %2039 = vmatprep.subr.mxu0 %v536_v48  ;;  %v785_v35 = vld [vmem:[%s3303_s3 + $0x110] sm:$0xff]  ;;  %v752_v37 = vld [vmem:[%s3303_s3 + $0x8] sm:$0xff]  ;;  %v767_v39 = vld [vmem:[%s3303_s3 + $0x80] sm:$0xff] }
  0x62   : > { %2373 = vmatprep.subr.mxu1 %v553_v50  ;;  %2040 = vmatpush3.msra.mxu0 %v520_v52  ;;  %v784_v38 = vld [vmem:[%s3303_s3 + $0x108] sm:$0xff]  ;;  %v783_v41 = vld [vmem:[%s3303_s3 + $0x100] sm:$0xff] }
  0x63   : > { %2374 = vmatpush3.msra.mxu1 %v553_v50  ;;  %640 = vmatmul.mubr.f32.vlgmr.msra.gmra.mxu0 %v511_v53  ;;  %v1999_v44 = vld [vmem:[%s3302_s2] ss:$0 sm:$0xff] }
  0x64   : > { %2375 = vmatprep.subr.mxu1 %v552_v54  ;;  %644 = vmatprep.mubr.f32.mxu0 %v501_v40  ;;  %v751_v40 = vld [vmem:[%s3303_s3] sm:$0xff] }
  0x65   : > { %2376 = vmatpush3.msra.mxu1 %v552_v54  ;;  %2377 = vmatprep.mubr.f32.mxu1 %v515_v55 }
  0x66   : > { %2378 = vmatmul.mubr.f32.vlgmr.msra.gmra.mxu1 %v519_v56  ;;  %2065 = vmatprep.subr.mxu0 %v782_v58 }
  0x67   : > { %645 = vmatmul.mubr.f32.gmra.mxu0 %v508_v57  ;;  %2380 = vmatprep.subr.mxu1 %v798_v60 }
  0x68   : > { %2066 = vmatpush3.msra.mxu0 %v766_v59  ;;  %2381 = vmatpush3.msra.mxu1 %v798_v60 }
  0x69   : > { %2067 = vmatprep.subr.mxu0 %v781_v61  ;;  %2382 = vmatprep.subr.mxu1 %v797_v63 }
  0x6a   : > { %2068 = vmatpush3.msra.mxu0 %v765_v62  ;;  %2383 = vmatpush3.msra.mxu1 %v797_v63 }
  0x6b   : > { %2069 = vmatprep.subr.mxu0 %v780_v0  ;;  %2384 = vmatprep.subr.mxu1 %v796_v2 }
  0x6c   : > { %2070 = vmatpush3.msra.mxu0 %v764_v1  ;;  %2385 = vmatpush3.msra.mxu1 %v796_v2 }
  0x6d   : > { %2071 = vmatprep.subr.mxu0 %v779_v3  ;;  %2386 = vmatprep.subr.mxu1 %v795_v5 }
  0x6e   : > { %2072 = vmatpush3.msra.mxu0 %v763_v4  ;;  %2387 = vmatpush3.msra.mxu1 %v795_v5 }
  0x6f   : > { %2073 = vmatprep.subr.mxu0 %v778_v6  ;;  %2388 = vmatprep.subr.mxu1 %v794_v8 }
  0x70   : > { %2074 = vmatpush3.msra.mxu0 %v762_v7  ;;  %2389 = vmatpush3.msra.mxu1 %v794_v8 }
  0x71   : > { %2075 = vmatprep.subr.mxu0 %v777_v9  ;;  %2390 = vmatprep.subr.mxu1 %v793_v11  ;;  %v1013_v9 = vld [vmem:[#allocation2 + $0xf8] sm:$0xff] }
  0x72   : > { %2076 = vmatpush3.msra.mxu0 %v761_v10  ;;  %2391 = vmatpush3.msra.mxu1 %v793_v11  ;;  %v997_v10 = vld [vmem:[#allocation2 + $0x78] sm:$0xff] }
  0x73   : > { %2077 = vmatprep.subr.mxu0 %v776_v12  ;;  %2392 = vmatprep.subr.mxu1 %v792_v14  ;;  %v1029_v11 = vld [vmem:[#allocation2 + $0x178] sm:$0xff]  ;;  %v1012_v12 = vld [vmem:[#allocation2 + $0xf0] sm:$0xff] }
  0x74   : > { %2078 = vmatpush3.msra.mxu0 %v760_v13  ;;  %2393 = vmatpush3.msra.mxu1 %v792_v14  ;;  %v996_v13 = vld [vmem:[#allocation2 + $0x70] sm:$0xff] }
  0x75   : > { %2079 = vmatprep.subr.mxu0 %v775_v15  ;;  %2394 = vmatprep.subr.mxu1 %v791_v17  ;;  %v1028_v14 = vld [vmem:[#allocation2 + $0x170] sm:$0xff]  ;;  %v1011_v15 = vld [vmem:[#allocation2 + $0xe8] sm:$0xff] }
  0x76   : > { %2080 = vmatpush3.msra.mxu0 %v759_v16  ;;  %2395 = vmatpush3.msra.mxu1 %v791_v17  ;;  %v995_v16 = vld [vmem:[#allocation2 + $0x68] sm:$0xff] }
  0x77   : > { %2081 = vmatprep.subr.mxu0 %v774_v18  ;;  %2396 = vmatprep.subr.mxu1 %v790_v20  ;;  %v1027_v17 = vld [vmem:[#allocation2 + $0x168] sm:$0xff]  ;;  %v1010_v18 = vld [vmem:[#allocation2 + $0xe0] sm:$0xff] }
  0x78   : > { %2082 = vmatpush3.msra.mxu0 %v758_v19  ;;  %2397 = vmatpush3.msra.mxu1 %v790_v20  ;;  %v994_v19 = vld [vmem:[#allocation2 + $0x60] sm:$0xff] }
  0x79   : > { %2083 = vmatprep.subr.mxu0 %v773_v21  ;;  %2398 = vmatprep.subr.mxu1 %v789_v23  ;;  %v1026_v20 = vld [vmem:[#allocation2 + $0x160] sm:$0xff]  ;;  %v1009_v21 = vld [vmem:[#allocation2 + $0xd8] sm:$0xff] }
  0x7a   : > { %2084 = vmatpush3.msra.mxu0 %v757_v22  ;;  %2399 = vmatpush3.msra.mxu1 %v789_v23  ;;  %v993_v22 = vld [vmem:[#allocation2 + $0x58] sm:$0xff] }
  0x7b   : > { %2085 = vmatprep.subr.mxu0 %v772_v24  ;;  %2400 = vmatprep.subr.mxu1 %v788_v26  ;;  %v1025_v23 = vld [vmem:[#allocation2 + $0x158] sm:$0xff]  ;;  %v1008_v24 = vld [vmem:[#allocation2 + $0xd0] sm:$0xff] }
  0x7c   : > { %2086 = vmatpush3.msra.mxu0 %v756_v25  ;;  %2401 = vmatpush3.msra.mxu1 %v788_v26  ;;  %v992_v25 = vld [vmem:[#allocation2 + $0x50] sm:$0xff] }
  0x7d   : > { %2087 = vmatprep.subr.mxu0 %v771_v27  ;;  %2402 = vmatprep.subr.mxu1 %v787_v29  ;;  %v1024_v26 = vld [vmem:[#allocation2 + $0x150] sm:$0xff]  ;;  %v1007_v27 = vld [vmem:[#allocation2 + $0xc8] sm:$0xff] }
  0x7e   : > { %2088 = vmatpush3.msra.mxu0 %v755_v28  ;;  %2403 = vmatpush3.msra.mxu1 %v787_v29  ;;  %v991_v28 = vld [vmem:[#allocation2 + $0x48] sm:$0xff] }
  0x7f   : > { %2089 = vmatprep.subr.mxu0 %v770_v30  ;;  %2404 = vmatprep.subr.mxu1 %v786_v32  ;;  %v1023_v29 = vld [vmem:[#allocation2 + $0x148] sm:$0xff]  ;;  %v1006_v30 = vld [vmem:[#allocation2 + $0xc0] sm:$0xff] }
  0x80   : > { %2090 = vmatpush3.msra.mxu0 %v754_v31  ;;  %2405 = vmatpush3.msra.mxu1 %v786_v32  ;;  %v990_v31 = vld [vmem:[#allocation2 + $0x40] sm:$0xff] }
  0x81   : > { %2091 = vmatprep.subr.mxu0 %v769_v33  ;;  %2406 = vmatprep.subr.mxu1 %v785_v35  ;;  %v1022_v32 = vld [vmem:[#allocation2 + $0x140] sm:$0xff]  ;;  %v1005_v33 = vld [vmem:[#allocation2 + $0xb8] sm:$0xff] }
  0x82   : > { %2092 = vmatpush3.msra.mxu0 %v753_v34  ;;  %2407 = vmatpush3.msra.mxu1 %v785_v35  ;;  %v989_v34 = vld [vmem:[#allocation2 + $0x38] sm:$0xff] }
  0x83   : > { %2093 = vmatprep.subr.mxu0 %v768_v36  ;;  %2408 = vmatprep.subr.mxu1 %v784_v38  ;;  %v1021_v35 = vld [vmem:[#allocation2 + $0x138] sm:$0xff]  ;;  %v1004_v36 = vld [vmem:[#allocation2 + $0xb0] sm:$0xff] }
  0x84   : > { %2094 = vmatpush3.msra.mxu0 %v752_v37  ;;  %2409 = vmatpush3.msra.mxu1 %v784_v38  ;;  %v988_v37 = vld [vmem:[#allocation2 + $0x30] sm:$0xff] }
  0x85   : > { %2095 = vmatprep.subr.mxu0 %v767_v39  ;;  %2410 = vmatprep.subr.mxu1 %v783_v41  ;;  %v1020_v38 = vld [vmem:[#allocation2 + $0x130] sm:$0xff]  ;;  %v1003_v39 = vld [vmem:[#allocation2 + $0xa8] sm:$0xff] }
  0x86   : > { %2096 = vmatpush3.msra.mxu0 %v751_v40  ;;  %2411 = vmatpush3.msra.mxu1 %v783_v41  ;;  %v987_v40 = vld [vmem:[#allocation2 + $0x28] sm:$0xff] }
  0x87   : > { %2121 = vmatprep.subr.mxu0 %v1013_v9  ;;  %2415 = vmatprep.subr.mxu1 %v1029_v11  ;;  %v1019_v41 = vld [vmem:[#allocation2 + $0x128] sm:$0xff] }
 0x123   : > { %v2041_v42 = vpop.f32.mrf.mxu0 }
 0x125   : > { %v2042_v43 = vpop.f32.mrf.mxu0 }
 0x126   : > { %v2043_v45 = vadd.f32 %v2042_v43, %v2041_v42  ;;  %v2379_v46 = vpop.f32.mrf.mxu1  ;;  %v1002_v42 = vld [vmem:[#allocation2 + $0xa0] sm:$0xff] }
 0x127   : > { %v2044_v47 = vpop.f32.mrf.mxu0  ;;  %v986_v43 = vld [vmem:[#allocation2 + $0x20] sm:$0xff] }
 0x128   : > { %v642_v48 = vadd.f32 %v2043_v45, %v1999_v44  ;;  %v716_v49 = vpop.f32.mrf.mxu1  ;;  %v1001_v45 = vld [vmem:[#allocation2 + $0x98] sm:$0xff] }
 0x129   : > { %v2045_v50 = vpop.f32.mrf.mxu0 }
 0x12a   : > { %v2046_v51 = vadd.f32 %v2045_v50, %v2044_v47  ;;  %v717_v52 = vadd.f32 %v716_v49, %v642_v48  ;;  %v1017_v47 = vld [vmem:[#allocation2 + $0x118] sm:$0xff]  ;;  %v1000_v48 = vld [vmem:[#allocation2 + $0x90] sm:$0xff] }
 0x12b   : > { %v984_v49 = vld [vmem:[#allocation2 + $0x10] sm:$0xff] }
 0x12c   : > { %v647_v53 = vadd.f32 %v2046_v51, %v1999_v44  ;;  %v727_v54 = vmul.f32 0.70710677, %v717_v52  ;;  %v725_v58 = vmul.f32 0.5, %v717_v52  ;;  %v1018_v44 = vld [vmem:[#allocation2 + $0x120] sm:$0xff]  ;;  %v1016_v50 = vld [vmem:[#allocation2 + $0x110] sm:$0xff]  ;;  %v999_v51 = vld [vmem:[#allocation2 + $0x88] sm:$0xff] }
 0x12d   : > { %v983_v52 = vld [vmem:[#allocation2 + $0x8] sm:$0xff] }
 0x12e   : > { %v722_v55 = vadd.f32 %v2379_v46, %v647_v53  ;;  %2606 = verf.f32 %v727_v54  ;;  %v985_v46 = vld [vmem:[#allocation2 + $0x18] sm:$0xff]  ;;  %v1015_v53 = vld [vmem:[#allocation2 + $0x108] sm:$0xff]  ;;  %v998_v54 = vld [vmem:[#allocation2 + $0x80] sm:$0xff] }
 0x130   : > { %v728_v56 = vmul.f32 0.70710677, %v722_v55  ;;  %v726_v62 = vmul.f32 0.5, %v722_v55  ;;  %v982_v55 = vld [vmem:[#allocation2] sm:$0xff] }
 0x132   : > { %2608 = verf.f32 %v728_v56  ;;  %v1014_v56 = vld [vmem:[#allocation2 + $0x100] sm:$0xff] }
 0x13b   : > { %v2607_v57 = vpop.eup %2606 }
 0x13c   : > { %v731_v59 = vadd.f32 1.0, %v2607_v57 }
 0x13e   : > { %v3233_v60 = vmul.f32 %v731_v59, %v725_v58 }
 0x13f   : > { %v2609_v61 = vpop.eup %2608 }
 0x140   : > { %v732_v63 = vadd.f32 1.0, %v2609_v61  ;;  %870 = vmatprep.mubr.f32.mxu0 %v3233_v60  ;;  %v739_v2 = vrot.slane %v3233_v60, 7  ;;  %v744_v3 = vrot.slane %v3233_v60, 1  ;;  %v2000_v61 = vld [vmem:[%s3304_s4] ss:$0 sm:$0xff] }
 0x142   : > { %v3236_v0 = vmul.f32 %v732_v63, %v726_v62 }
 0x144   : > { %v736_v1 = vrot.slane %v3236_v0, 7  ;;  %v745_v4 = vrot.slane %v3236_v0, 1 }
 0x146   : > { %v743_v5 = vsel %vm506_vm0, %v736_v1, %v739_v2  ;;  %v746_v6 = vsel %vm512_vm1, %v744_v3, %v745_v4  ;;  %v750_v7 = vsel %vm512_vm1, %v745_v4, %v744_v3  ;;  %v740_v8 = vsel %vm506_vm0, %v739_v2, %v736_v1 }
 0x147   : > { %871 = vmatmul.mubr.f32.vlgmr.msra.gmra.mxu0 %v743_v5  ;;  %2412 = vmatprep.mubr.f32.mxu1 %v746_v6 }
 0x148   : > { %875 = vmatprep.mubr.f32.mxu0 %v3236_v0  ;;  %2413 = vmatmul.mubr.f32.vlgmr.msra.gmra.mxu1 %v750_v7 }
 0x149   : > { %2122 = vmatpush3.msra.mxu0 %v997_v10  ;;  %2416 = vmatpush3.msra.mxu1 %v1029_v11 }
 0x14a   : > { %2123 = vmatprep.subr.mxu0 %v1012_v12  ;;  %2417 = vmatprep.subr.mxu1 %v1028_v14 }
 0x14b   : > { %876 = vmatmul.mubr.f32.gmra.mxu0 %v740_v8  ;;  %2418 = vmatpush3.msra.mxu1 %v1028_v14 }
 0x14c   : > { %2124 = vmatpush3.msra.mxu0 %v996_v13  ;;  %2419 = vmatprep.subr.mxu1 %v1027_v17 }
 0x14d   : > { %2125 = vmatprep.subr.mxu0 %v1011_v15  ;;  %2420 = vmatpush3.msra.mxu1 %v1027_v17 }
 0x14e   : > { %2126 = vmatpush3.msra.mxu0 %v995_v16  ;;  %2421 = vmatprep.subr.mxu1 %v1026_v20 }
 0x14f   : > { %2127 = vmatprep.subr.mxu0 %v1010_v18  ;;  %2422 = vmatpush3.msra.mxu1 %v1026_v20 }
 0x150   : > { %2128 = vmatpush3.msra.mxu0 %v994_v19  ;;  %2423 = vmatprep.subr.mxu1 %v1025_v23 }
 0x151   : > { %2129 = vmatprep.subr.mxu0 %v1009_v21  ;;  %2424 = vmatpush3.msra.mxu1 %v1025_v23 }
 0x152   : > { %2130 = vmatpush3.msra.mxu0 %v993_v22  ;;  %2425 = vmatprep.subr.mxu1 %v1024_v26 }
 0x153   : > { %2131 = vmatprep.subr.mxu0 %v1008_v24  ;;  %2426 = vmatpush3.msra.mxu1 %v1024_v26  ;;  %v1246_v26 = vld [vmem:[#allocation4 + $0xf8] sm:$0xff] }
 0x154   : > { %2132 = vmatpush3.msra.mxu0 %v992_v25  ;;  %2427 = vmatprep.subr.mxu1 %v1023_v29 }
 0x155   : > { %2133 = vmatprep.subr.mxu0 %v1007_v27  ;;  %2428 = vmatpush3.msra.mxu1 %v1023_v29  ;;  %v1230_v27 = vld [vmem:[#allocation4 + $0x78] sm:$0xff]  ;;  %v1245_v29 = vld [vmem:[#allocation4 + $0xf0] sm:$0xff] }
 0x156   : > { %2134 = vmatpush3.msra.mxu0 %v991_v28  ;;  %2429 = vmatprep.subr.mxu1 %v1022_v32  ;;  %v1262_v28 = vld [vmem:[#allocation4 + $0x178] sm:$0xff] }
 0x157   : > { %2135 = vmatprep.subr.mxu0 %v1006_v30  ;;  %2430 = vmatpush3.msra.mxu1 %v1022_v32  ;;  %v1229_v30 = vld [vmem:[#allocation4 + $0x70] sm:$0xff]  ;;  %v1244_v32 = vld [vmem:[#allocation4 + $0xe8] sm:$0xff] }
 0x158   : > { %2136 = vmatpush3.msra.mxu0 %v990_v31  ;;  %2431 = vmatprep.subr.mxu1 %v1021_v35  ;;  %v1261_v31 = vld [vmem:[#allocation4 + $0x170] sm:$0xff] }
 0x159   : > { %2137 = vmatprep.subr.mxu0 %v1005_v33  ;;  %2432 = vmatpush3.msra.mxu1 %v1021_v35  ;;  %v1228_v33 = vld [vmem:[#allocation4 + $0x68] sm:$0xff]  ;;  %v1243_v35 = vld [vmem:[#allocation4 + $0xe0] sm:$0xff] }
 0x15a   : > { %2138 = vmatpush3.msra.mxu0 %v989_v34  ;;  %2433 = vmatprep.subr.mxu1 %v1020_v38  ;;  %v1260_v34 = vld [vmem:[#allocation4 + $0x168] sm:$0xff] }
 0x15b   : > { %2139 = vmatprep.subr.mxu0 %v1004_v36  ;;  %2434 = vmatpush3.msra.mxu1 %v1020_v38  ;;  %v1227_v36 = vld [vmem:[#allocation4 + $0x60] sm:$0xff]  ;;  %v1242_v38 = vld [vmem:[#allocation4 + $0xd8] sm:$0xff] }
 0x15c   : > { %2140 = vmatpush3.msra.mxu0 %v988_v37  ;;  %2435 = vmatprep.subr.mxu1 %v1019_v41  ;;  %v1259_v37 = vld [vmem:[#allocation4 + $0x160] sm:$0xff] }
 0x15d   : > { %2141 = vmatprep.subr.mxu0 %v1003_v39  ;;  %2436 = vmatpush3.msra.mxu1 %v1019_v41  ;;  %v1226_v39 = vld [vmem:[#allocation4 + $0x58] sm:$0xff]  ;;  %v1241_v41 = vld [vmem:[#allocation4 + $0xd0] sm:$0xff] }
 0x15e   : > { %2142 = vmatpush3.msra.mxu0 %v987_v40  ;;  %2437 = vmatprep.subr.mxu1 %v1018_v44  ;;  %v1258_v40 = vld [vmem:[#allocation4 + $0x158] sm:$0xff] }
 0x15f   : > { %2143 = vmatprep.subr.mxu0 %v1002_v42  ;;  %2438 = vmatpush3.msra.mxu1 %v1018_v44  ;;  %v1225_v42 = vld [vmem:[#allocation4 + $0x50] sm:$0xff]  ;;  %v1240_v44 = vld [vmem:[#allocation4 + $0xc8] sm:$0xff] }
 0x160   : > { %2144 = vmatpush3.msra.mxu0 %v986_v43  ;;  %2439 = vmatprep.subr.mxu1 %v1017_v47  ;;  %v1257_v43 = vld [vmem:[#allocation4 + $0x150] sm:$0xff] }
 0x161   : > { %2145 = vmatprep.subr.mxu0 %v1001_v45  ;;  %2440 = vmatpush3.msra.mxu1 %v1017_v47  ;;  %v1224_v45 = vld [vmem:[#allocation4 + $0x48] sm:$0xff]  ;;  %v1239_v47 = vld [vmem:[#allocation4 + $0xc0] sm:$0xff] }
 0x162   : > { %2146 = vmatpush3.msra.mxu0 %v985_v46  ;;  %2441 = vmatprep.subr.mxu1 %v1016_v50  ;;  %v1256_v46 = vld [vmem:[#allocation4 + $0x148] sm:$0xff] }
 0x163   : > { %2147 = vmatprep.subr.mxu0 %v1000_v48  ;;  %2442 = vmatpush3.msra.mxu1 %v1016_v50  ;;  %v1223_v48 = vld [vmem:[#allocation4 + $0x40] sm:$0xff]  ;;  %v1238_v50 = vld [vmem:[#allocation4 + $0xb8] sm:$0xff] }
 0x164   : > { %2148 = vmatpush3.msra.mxu0 %v984_v49  ;;  %2443 = vmatprep.subr.mxu1 %v1015_v53  ;;  %v1255_v49 = vld [vmem:[#allocation4 + $0x140] sm:$0xff] }
 0x165   : > { %2149 = vmatprep.subr.mxu0 %v999_v51  ;;  %2444 = vmatpush3.msra.mxu1 %v1015_v53  ;;  %v1222_v51 = vld [vmem:[#allocation4 + $0x38] sm:$0xff]  ;;  %v1237_v53 = vld [vmem:[#allocation4 + $0xb0] sm:$0xff] }
 0x166   : > { %2150 = vmatpush3.msra.mxu0 %v983_v52  ;;  %2445 = vmatprep.subr.mxu1 %v1014_v56  ;;  %v1254_v52 = vld [vmem:[#allocation4 + $0x138] sm:$0xff] }
 0x167   : > { %2151 = vmatprep.subr.mxu0 %v998_v54  ;;  %2446 = vmatpush3.msra.mxu1 %v1014_v56  ;;  %v1221_v54 = vld [vmem:[#allocation4 + $0x30] sm:$0xff]  ;;  %v1236_v56 = vld [vmem:[#allocation4 + $0xa8] sm:$0xff] }
 0x168   : > { %2152 = vmatpush3.msra.mxu0 %v982_v55  ;;  %2450 = vmatprep.subr.mxu1 %v1262_v28  ;;  %v1253_v55 = vld [vmem:[#allocation4 + $0x130] sm:$0xff] }
 0x169   : > { %2177 = vmatprep.subr.mxu0 %v1246_v26 }
 0x207   : > { %v2097_v57 = vpop.f32.mrf.mxu0 }
 0x208   : > { %v2414_v58 = vpop.f32.mrf.mxu1 }
 0x209   : > { %v2098_v59 = vpop.f32.mrf.mxu0 }
 0x20a   : > { %v2099_v62 = vadd.f32 %v2098_v59, %v2097_v57  ;;  %v947_v2 = vpop.f32.mrf.mxu1  ;;  %v1220_v57 = vld [vmem:[#allocation4 + $0x28] sm:$0xff]  ;;  %v1235_v59 = vld [vmem:[#allocation4 + $0xa0] sm:$0xff] }
 0x20b   : > { %v2100_v63 = vpop.f32.mrf.mxu0 }
 0x20c   : > { %v873_v1 = vadd.f32 %v2099_v62, %v2000_v61  ;;  %v1251_v62 = vld [vmem:[#allocation4 + $0x120] sm:$0xff] }
 0x20d   : > { %v2101_v3 = vpop.f32.mrf.mxu0 }
 0x20e   : > { %v948_v4 = vadd.f32 %v947_v2, %v873_v1  ;;  %v2102_v5 = vadd.f32 %v2101_v3, %v2100_v63  ;;  %v1234_v63 = vld [vmem:[#allocation4 + $0x98] sm:$0xff]  ;;  %v1233_v3 = vld [vmem:[#allocation4 + $0x90] sm:$0xff] }
 0x20f   : > { %v1218_v1 = vld [vmem:[#allocation4 + $0x18] sm:$0xff] }
 0x210   : > { %v958_v6 = vmul.f32 0.70710677, %v948_v4  ;;  %v878_v7 = vadd.f32 %v2102_v5, %v2000_v61  ;;  %v956_v11 = vmul.f32 0.5, %v948_v4  ;;  %v1219_v61 = vld [vmem:[#allocation4 + $0x20] sm:$0xff]  ;;  %v1250_v2 = vld [vmem:[#allocation4 + $0x118] sm:$0xff]  ;;  %v1217_v4 = vld [vmem:[#allocation4 + $0x10] sm:$0xff] }
 0x211   : > { %v1249_v5 = vld [vmem:[#allocation4 + $0x110] sm:$0xff] }
 0x212   : > { %2610 = verf.f32 %v958_v6  ;;  %v953_v8 = vadd.f32 %v2414_v58, %v878_v7  ;;  %v1252_v58 = vld [vmem:[#allocation4 + $0x128] sm:$0xff] }
 0x213   : > { %v1232_v6 = vld [vmem:[#allocation4 + $0x88] sm:$0xff] }
 0x214   : > { %v959_v9 = vmul.f32 0.70710677, %v953_v8  ;;  %v957_v15 = vmul.f32 0.5, %v953_v8  ;;  %v1216_v7 = vld [vmem:[#allocation4 + $0x8] sm:$0xff] }
 0x215   : > { %v1248_v8 = vld [vmem:[#allocation4 + $0x108] sm:$0xff] }
 0x216   : > { %2612 = verf.f32 %v959_v9  ;;  %v1231_v9 = vld [vmem:[#allocation4 + $0x80] sm:$0xff] }
 0x21f   : > { %v2611_v10 = vpop.eup %2610 }
 0x220   : > { %v962_v12 = vadd.f32 1.0, %v2611_v10  ;;  %v1215_v10 = vld [vmem:[#allocation4] sm:$0xff] }
 0x222   : > { %v964_v13 = vmul.f32 %v962_v12, %v956_v11  ;;  %v1247_v11 = vld [vmem:[#allocation4 + $0x100] sm:$0xff] }
 0x223   : > { %v2613_v14 = vpop.eup %2612 }
 0x224   : > { %v963_v16 = vadd.f32 1.0, %v2613_v14  ;;  %1101 = vmatprep.mubr.f32.mxu0 %v964_v13  ;;  %v970_v18 = vrot.slane %v964_v13, 7  ;;  %v975_v20 = vrot.slane %v964_v13, 1 }
 0x226   : > { %v965_v17 = vmul.f32 %v963_v16, %v957_v15  ;;  %v2001_v15 = vld [vmem:[%s3306_s6] ss:$0 sm:$0xff] }
 0x228   : > { %v967_v19 = vrot.slane %v965_v17, 7  ;;  %v976_v21 = vrot.slane %v965_v17, 1 }
 0x22a   : > { %v974_v22 = vsel %vm506_vm0, %v967_v19, %v970_v18  ;;  %v977_v23 = vsel %vm512_vm1, %v975_v20, %v976_v21  ;;  %v981_v24 = vsel %vm512_vm1, %v976_v21, %v975_v20  ;;  %v971_v25 = vsel %vm506_vm0, %v970_v18, %v967_v19 }
 0x22b   : > { %1102 = vmatmul.mubr.f32.vlgmr.msra.gmra.mxu0 %v974_v22  ;;  %2447 = vmatprep.mubr.f32.mxu1 %v977_v23 }
 0x22c   : > { %1106 = vmatprep.mubr.f32.mxu0 %v965_v17  ;;  %2448 = vmatmul.mubr.f32.vlgmr.msra.gmra.mxu1 %v981_v24 }
 0x22d   : > { %2178 = vmatpush3.msra.mxu0 %v1230_v27  ;;  %2451 = vmatpush3.msra.mxu1 %v1262_v28 }
 0x22e   : > { %2179 = vmatprep.subr.mxu0 %v1245_v29  ;;  %2452 = vmatprep.subr.mxu1 %v1261_v31 }
 0x22f   : > { %1107 = vmatmul.mubr.f32.gmra.mxu0 %v971_v25  ;;  %2453 = vmatpush3.msra.mxu1 %v1261_v31 }
 0x230   : > { %2180 = vmatpush3.msra.mxu0 %v1229_v30  ;;  %2454 = vmatprep.subr.mxu1 %v1260_v34 }
 0x231   : > { %2181 = vmatprep.subr.mxu0 %v1244_v32  ;;  %2455 = vmatpush3.msra.mxu1 %v1260_v34 }
 0x232   : > { %2182 = vmatpush3.msra.mxu0 %v1228_v33  ;;  %2456 = vmatprep.subr.mxu1 %v1259_v37 }
 0x233   : > { %2183 = vmatprep.subr.mxu0 %v1243_v35  ;;  %2457 = vmatpush3.msra.mxu1 %v1259_v37 }
 0x234   : > { %2184 = vmatpush3.msra.mxu0 %v1227_v36  ;;  %2458 = vmatprep.subr.mxu1 %v1258_v40 }
 0x235   : > { %2185 = vmatprep.subr.mxu0 %v1242_v38  ;;  %2459 = vmatpush3.msra.mxu1 %v1258_v40 }
 0x236   : > { %2186 = vmatpush3.msra.mxu0 %v1226_v39  ;;  %2460 = vmatprep.subr.mxu1 %v1257_v43 }
 0x237   : > { %2187 = vmatprep.subr.mxu0 %v1241_v41  ;;  %2461 = vmatpush3.msra.mxu1 %v1257_v43  ;;  %v1477_v43 = vld [vmem:[#allocation6 + $0xf8] sm:$0xff] }
 0x238   : > { %2188 = vmatpush3.msra.mxu0 %v1225_v42  ;;  %2462 = vmatprep.subr.mxu1 %v1256_v46 }
 0x239   : > { %2189 = vmatprep.subr.mxu0 %v1240_v44  ;;  %2463 = vmatpush3.msra.mxu1 %v1256_v46  ;;  %v1461_v44 = vld [vmem:[#allocation6 + $0x78] sm:$0xff]  ;;  %v1476_v46 = vld [vmem:[#allocation6 + $0xf0] sm:$0xff] }
 0x23a   : > { %2190 = vmatpush3.msra.mxu0 %v1224_v45  ;;  %2464 = vmatprep.subr.mxu1 %v1255_v49  ;;  %v1493_v45 = vld [vmem:[#allocation6 + $0x178] sm:$0xff] }
 0x23b   : > { %2191 = vmatprep.subr.mxu0 %v1239_v47  ;;  %2465 = vmatpush3.msra.mxu1 %v1255_v49  ;;  %v1460_v47 = vld [vmem:[#allocation6 + $0x70] sm:$0xff]  ;;  %v1475_v49 = vld [vmem:[#allocation6 + $0xe8] sm:$0xff] }
 0x23c   : > { %2192 = vmatpush3.msra.mxu0 %v1223_v48  ;;  %2466 = vmatprep.subr.mxu1 %v1254_v52  ;;  %v1492_v48 = vld [vmem:[#allocation6 + $0x170] sm:$0xff] }
 0x23d   : > { %2193 = vmatprep.subr.mxu0 %v1238_v50  ;;  %2467 = vmatpush3.msra.mxu1 %v1254_v52  ;;  %v1459_v50 = vld [vmem:[#allocation6 + $0x68] sm:$0xff]  ;;  %v1474_v52 = vld [vmem:[#allocation6 + $0xe0] sm:$0xff] }
 0x23e   : > { %2194 = vmatpush3.msra.mxu0 %v1222_v51  ;;  %2468 = vmatprep.subr.mxu1 %v1253_v55  ;;  %v1491_v51 = vld [vmem:[#allocation6 + $0x168] sm:$0xff] }
 0x23f   : > { %2195 = vmatprep.subr.mxu0 %v1237_v53  ;;  %2469 = vmatpush3.msra.mxu1 %v1253_v55  ;;  %v1458_v53 = vld [vmem:[#allocation6 + $0x60] sm:$0xff]  ;;  %v1473_v55 = vld [vmem:[#allocation6 + $0xd8] sm:$0xff] }
 0x240   : > { %2196 = vmatpush3.msra.mxu0 %v1221_v54  ;;  %2470 = vmatprep.subr.mxu1 %v1252_v58  ;;  %v1490_v54 = vld [vmem:[#allocation6 + $0x160] sm:$0xff] }
 0x241   : > { %2197 = vmatprep.subr.mxu0 %v1236_v56  ;;  %2471 = vmatpush3.msra.mxu1 %v1252_v58  ;;  %v1457_v56 = vld [vmem:[#allocation6 + $0x58] sm:$0xff]  ;;  %v1472_v58 = vld [vmem:[#allocation6 + $0xd0] sm:$0xff] }
 0x242   : > { %2198 = vmatpush3.msra.mxu0 %v1220_v57  ;;  %2472 = vmatprep.subr.mxu1 %v1251_v62  ;;  %v1489_v57 = vld [vmem:[#allocation6 + $0x158] sm:$0xff] }
 0x243   : > { %2199 = vmatprep.subr.mxu0 %v1235_v59  ;;  %2473 = vmatpush3.msra.mxu1 %v1251_v62  ;;  %v1456_v59 = vld [vmem:[#allocation6 + $0x50] sm:$0xff]  ;;  %v1471_v62 = vld [vmem:[#allocation6 + $0xc8] sm:$0xff] }
 0x244   : > { %2200 = vmatpush3.msra.mxu0 %v1219_v61  ;;  %2474 = vmatprep.subr.mxu1 %v1250_v2  ;;  %v1488_v61 = vld [vmem:[#allocation6 + $0x150] sm:$0xff] }
 0x245   : > { %2201 = vmatprep.subr.mxu0 %v1234_v63  ;;  %2475 = vmatpush3.msra.mxu1 %v1250_v2  ;;  %v1455_v63 = vld [vmem:[#allocation6 + $0x48] sm:$0xff]  ;;  %v1470_v2 = vld [vmem:[#allocation6 + $0xc0] sm:$0xff] }
 0x246   : > { %2202 = vmatpush3.msra.mxu0 %v1218_v1  ;;  %2476 = vmatprep.subr.mxu1 %v1249_v5  ;;  %v1487_v1 = vld [vmem:[#allocation6 + $0x148] sm:$0xff] }
 0x247   : > { %2203 = vmatprep.subr.mxu0 %v1233_v3  ;;  %2477 = vmatpush3.msra.mxu1 %v1249_v5  ;;  %v1454_v3 = vld [vmem:[#allocation6 + $0x40] sm:$0xff]  ;;  %v1469_v5 = vld [vmem:[#allocation6 + $0xb8] sm:$0xff] }
 0x248   : > { %2204 = vmatpush3.msra.mxu0 %v1217_v4  ;;  %2478 = vmatprep.subr.mxu1 %v1248_v8  ;;  %v1486_v4 = vld [vmem:[#allocation6 + $0x140] sm:$0xff] }
 0x249   : > { %2205 = vmatprep.subr.mxu0 %v1232_v6  ;;  %2479 = vmatpush3.msra.mxu1 %v1248_v8  ;;  %v1453_v6 = vld [vmem:[#allocation6 + $0x38] sm:$0xff]  ;;  %v1468_v8 = vld [vmem:[#allocation6 + $0xb0] sm:$0xff] }
 0x24a   : > { %2206 = vmatpush3.msra.mxu0 %v1216_v7  ;;  %2480 = vmatprep.subr.mxu1 %v1247_v11  ;;  %v1485_v7 = vld [vmem:[#allocation6 + $0x138] sm:$0xff] }
 0x24b   : > { %2207 = vmatprep.subr.mxu0 %v1231_v9  ;;  %2481 = vmatpush3.msra.mxu1 %v1247_v11  ;;  %v1452_v9 = vld [vmem:[#allocation6 + $0x30] sm:$0xff]  ;;  %v1467_v11 = vld [vmem:[#allocation6 + $0xa8] sm:$0xff] }
 0x24c   : > { %2208 = vmatpush3.msra.mxu0 %v1215_v10  ;;  %2485 = vmatprep.subr.mxu1 %v1493_v45  ;;  %v1484_v10 = vld [vmem:[#allocation6 + $0x130] sm:$0xff] }
 0x24d   : > { %2233 = vmatprep.subr.mxu0 %v1477_v43 }
 0x2eb   : > { %v2153_v12 = vpop.f32.mrf.mxu0 }
 0x2ec   : > { %v2449_v13 = vpop.f32.mrf.mxu1 }
 0x2ed   : > { %v2154_v14 = vpop.f32.mrf.mxu0 }
 0x2ee   : > { %v2155_v16 = vadd.f32 %v2154_v14, %v2153_v12  ;;  %v1178_v19 = vpop.f32.mrf.mxu1  ;;  %v1451_v12 = vld [vmem:[#allocation6 + $0x28] sm:$0xff]  ;;  %v1466_v14 = vld [vmem:[#allocation6 + $0xa0] sm:$0xff] }
 0x2ef   : > { %v2156_v17 = vpop.f32.mrf.mxu0 }
 0x2f0   : > { %v1104_v18 = vadd.f32 %v2155_v16, %v2001_v15  ;;  %v1482_v16 = vld [vmem:[#allocation6 + $0x120] sm:$0xff] }
 0x2f1   : > { %v2157_v20 = vpop.f32.mrf.mxu0 }
 0x2f2   : > { %v1179_v21 = vadd.f32 %v1178_v19, %v1104_v18  ;;  %v2158_v22 = vadd.f32 %v2157_v20, %v2156_v17  ;;  %v1465_v17 = vld [vmem:[#allocation6 + $0x98] sm:$0xff]  ;;  %v1464_v20 = vld [vmem:[#allocation6 + $0x90] sm:$0xff] }
 0x2f3   : > { %v1449_v18 = vld [vmem:[#allocation6 + $0x18] sm:$0xff] }
 0x2f4   : > { %v1187_v23 = vadd.f32 %v1179_v21, %v3233_v60  ;;  %v1109_v24 = vadd.f32 %v2158_v22, %v2001_v15  ;;  %v1450_v15 = vld [vmem:[#allocation6 + $0x20] sm:$0xff]  ;;  %v1481_v19 = vld [vmem:[#allocation6 + $0x118] sm:$0xff]  ;;  %v1448_v21 = vld [vmem:[#allocation6 + $0x10] sm:$0xff] }
 0x2f5   : > { %v1480_v22 = vld [vmem:[#allocation6 + $0x110] sm:$0xff] }
 0x2f6   : > { %v1191_v25 = vmul.f32 0.70710677, %v1187_v23  ;;  %v1184_v26 = vadd.f32 %v2449_v13, %v1109_v24  ;;  %v1189_v30 = vmul.f32 0.5, %v1187_v23  ;;  %v1483_v13 = vld [vmem:[#allocation6 + $0x128] sm:$0xff] }
 0x2f7   : > { %v1463_v23 = vld [vmem:[#allocation6 + $0x88] sm:$0xff] }
 0x2f8   : > { %2614 = verf.f32 %v1191_v25  ;;  %v1188_v27 = vadd.f32 %v1184_v26, %v3236_v0  ;;  %v1447_v24 = vld [vmem:[#allocation6 + $0x8] sm:$0xff]  ;;  %v1462_v26 = vld [vmem:[#allocation6 + $0x80] sm:$0xff] }
 0x2f9   : > { %v1479_v25 = vld [vmem:[#allocation6 + $0x108] sm:$0xff] }
 0x2fa   : > { %v1192_v28 = vmul.f32 0.70710677, %v1188_v27  ;;  %v1190_v34 = vmul.f32 0.5, %v1188_v27  ;;  %v1446_v27 = vld [vmem:[#allocation6] sm:$0xff] }
 0x2fc   : > { %2616 = verf.f32 %v1192_v28  ;;  %v1478_v28 = vld [vmem:[#allocation6 + $0x100] sm:$0xff] }
 0x305   : > { %v2615_v29 = vpop.eup %2614 }
 0x306   : > { %v1195_v31 = vadd.f32 1.0, %v2615_v29 }
 0x308   : > { %v3259_v32 = vmul.f32 %v1195_v31, %v1189_v30 }
 0x309   : > { %v2617_v33 = vpop.eup %2616 }
 0x30a   : > { %v1196_v35 = vadd.f32 1.0, %v2617_v33  ;;  %1334 = vmatprep.mubr.f32.mxu0 %v3259_v32  ;;  %v1203_v37 = vrot.slane %v3259_v32, 7  ;;  %v1208_v0 = vrot.slane %v3259_v32, 1  ;;  %v2002_v33 = vld [vmem:[%s3308_s8] ss:$0 sm:$0xff] }
 0x30c   : > { %v3262_v36 = vmul.f32 %v1196_v35, %v1190_v34 }
 0x30e   : > { %v1200_v60 = vrot.slane %v3262_v36, 7  ;;  %v1209_v38 = vrot.slane %v3262_v36, 1 }
 0x310   : > { %v1207_v39 = vsel %vm506_vm0, %v1200_v60, %v1203_v37  ;;  %v1210_v40 = vsel %vm512_vm1, %v1208_v0, %v1209_v38  ;;  %v1214_v41 = vsel %vm512_vm1, %v1209_v38, %v1208_v0  ;;  %v1204_v42 = vsel %vm506_vm0, %v1203_v37, %v1200_v60 }
 0x311   : > { %1335 = vmatmul.mubr.f32.vlgmr.msra.gmra.mxu0 %v1207_v39  ;;  %2482 = vmatprep.mubr.f32.mxu1 %v1210_v40 }
 0x312   : > { %1339 = vmatprep.mubr.f32.mxu0 %v3262_v36  ;;  %2483 = vmatmul.mubr.f32.vlgmr.msra.gmra.mxu1 %v1214_v41 }
 0x313   : > { %2234 = vmatpush3.msra.mxu0 %v1461_v44  ;;  %2486 = vmatpush3.msra.mxu1 %v1493_v45 }
 0x314   : > { %2235 = vmatprep.subr.mxu0 %v1476_v46  ;;  %2487 = vmatprep.subr.mxu1 %v1492_v48 }
 0x315   : > { %1340 = vmatmul.mubr.f32.gmra.mxu0 %v1204_v42  ;;  %2488 = vmatpush3.msra.mxu1 %v1492_v48 }
 0x316   : > { %2236 = vmatpush3.msra.mxu0 %v1460_v47  ;;  %2489 = vmatprep.subr.mxu1 %v1491_v51 }
 0x317   : > { %2237 = vmatprep.subr.mxu0 %v1475_v49  ;;  %2490 = vmatpush3.msra.mxu1 %v1491_v51 }
 0x318   : > { %2238 = vmatpush3.msra.mxu0 %v1459_v50  ;;  %2491 = vmatprep.subr.mxu1 %v1490_v54 }
 0x319   : > { %2239 = vmatprep.subr.mxu0 %v1474_v52  ;;  %2492 = vmatpush3.msra.mxu1 %v1490_v54 }
 0x31a   : > { %2240 = vmatpush3.msra.mxu0 %v1458_v53  ;;  %2493 = vmatprep.subr.mxu1 %v1489_v57 }
 0x31b   : > { %2241 = vmatprep.subr.mxu0 %v1473_v55  ;;  %2494 = vmatpush3.msra.mxu1 %v1489_v57 }
 0x31c   : > { %2242 = vmatpush3.msra.mxu0 %v1457_v56  ;;  %2495 = vmatprep.subr.mxu1 %v1488_v61 }
 0x31d   : > { %2243 = vmatprep.subr.mxu0 %v1472_v58  ;;  %2496 = vmatpush3.msra.mxu1 %v1488_v61  ;;  %v1710_v61 = vld [vmem:[#allocation7 + $0xf8] sm:$0xff] }
 0x31e   : > { %2244 = vmatpush3.msra.mxu0 %v1456_v59  ;;  %2497 = vmatprep.subr.mxu1 %v1487_v1 }
 0x31f   : > { %2245 = vmatprep.subr.mxu0 %v1471_v62  ;;  %2498 = vmatpush3.msra.mxu1 %v1487_v1  ;;  %v1694_v62 = vld [vmem:[#allocation7 + $0x78] sm:$0xff]  ;;  %v1709_v1 = vld [vmem:[#allocation7 + $0xf0] sm:$0xff] }
 0x320   : > { %2246 = vmatpush3.msra.mxu0 %v1455_v63  ;;  %2499 = vmatprep.subr.mxu1 %v1486_v4  ;;  %v1726_v63 = vld [vmem:[#allocation7 + $0x178] sm:$0xff] }
 0x321   : > { %2247 = vmatprep.subr.mxu0 %v1470_v2  ;;  %2500 = vmatpush3.msra.mxu1 %v1486_v4  ;;  %v1693_v2 = vld [vmem:[#allocation7 + $0x70] sm:$0xff]  ;;  %v1708_v4 = vld [vmem:[#allocation7 + $0xe8] sm:$0xff] }
 0x322   : > { %2248 = vmatpush3.msra.mxu0 %v1454_v3  ;;  %2501 = vmatprep.subr.mxu1 %v1485_v7  ;;  %v1725_v3 = vld [vmem:[#allocation7 + $0x170] sm:$0xff] }
 0x323   : > { %2249 = vmatprep.subr.mxu0 %v1469_v5  ;;  %2502 = vmatpush3.msra.mxu1 %v1485_v7  ;;  %v1692_v5 = vld [vmem:[#allocation7 + $0x68] sm:$0xff]  ;;  %v1707_v7 = vld [vmem:[#allocation7 + $0xe0] sm:$0xff] }
 0x324   : > { %2250 = vmatpush3.msra.mxu0 %v1453_v6  ;;  %2503 = vmatprep.subr.mxu1 %v1484_v10  ;;  %v1724_v6 = vld [vmem:[#allocation7 + $0x168] sm:$0xff] }
 0x325   : > { %2251 = vmatprep.subr.mxu0 %v1468_v8  ;;  %2504 = vmatpush3.msra.mxu1 %v1484_v10  ;;  %v1691_v8 = vld [vmem:[#allocation7 + $0x60] sm:$0xff]  ;;  %v1706_v10 = vld [vmem:[#allocation7 + $0xd8] sm:$0xff] }
 0x326   : > { %2252 = vmatpush3.msra.mxu0 %v1452_v9  ;;  %2505 = vmatprep.subr.mxu1 %v1483_v13  ;;  %v1723_v9 = vld [vmem:[#allocation7 + $0x160] sm:$0xff] }
 0x327   : > { %2253 = vmatprep.subr.mxu0 %v1467_v11  ;;  %2506 = vmatpush3.msra.mxu1 %v1483_v13  ;;  %v1690_v11 = vld [vmem:[#allocation7 + $0x58] sm:$0xff]  ;;  %v1705_v13 = vld [vmem:[#allocation7 + $0xd0] sm:$0xff] }
 0x328   : > { %2254 = vmatpush3.msra.mxu0 %v1451_v12  ;;  %2507 = vmatprep.subr.mxu1 %v1482_v16  ;;  %v1722_v12 = vld [vmem:[#allocation7 + $0x158] sm:$0xff] }
 0x329   : > { %2255 = vmatprep.subr.mxu0 %v1466_v14  ;;  %2508 = vmatpush3.msra.mxu1 %v1482_v16  ;;  %v1689_v14 = vld [vmem:[#allocation7 + $0x50] sm:$0xff]  ;;  %v1704_v16 = vld [vmem:[#allocation7 + $0xc8] sm:$0xff] }
 0x32a   : > { %2256 = vmatpush3.msra.mxu0 %v1450_v15  ;;  %2509 = vmatprep.subr.mxu1 %v1481_v19  ;;  %v1721_v15 = vld [vmem:[#allocation7 + $0x150] sm:$0xff] }
 0x32b   : > { %2257 = vmatprep.subr.mxu0 %v1465_v17  ;;  %2510 = vmatpush3.msra.mxu1 %v1481_v19  ;;  %v1688_v17 = vld [vmem:[#allocation7 + $0x48] sm:$0xff]  ;;  %v1703_v19 = vld [vmem:[#allocation7 + $0xc0] sm:$0xff] }
 0x32c   : > { %2258 = vmatpush3.msra.mxu0 %v1449_v18  ;;  %2511 = vmatprep.subr.mxu1 %v1480_v22  ;;  %v1720_v18 = vld [vmem:[#allocation7 + $0x148] sm:$0xff] }
 0x32d   : > { %2259 = vmatprep.subr.mxu0 %v1464_v20  ;;  %2512 = vmatpush3.msra.mxu1 %v1480_v22  ;;  %v1687_v20 = vld [vmem:[#allocation7 + $0x40] sm:$0xff]  ;;  %v1702_v22 = vld [vmem:[#allocation7 + $0xb8] sm:$0xff] }
 0x32e   : > { %2260 = vmatpush3.msra.mxu0 %v1448_v21  ;;  %2513 = vmatprep.subr.mxu1 %v1479_v25  ;;  %v1719_v21 = vld [vmem:[#allocation7 + $0x140] sm:$0xff] }
 0x32f   : > { %2261 = vmatprep.subr.mxu0 %v1463_v23  ;;  %2514 = vmatpush3.msra.mxu1 %v1479_v25  ;;  %v1686_v23 = vld [vmem:[#allocation7 + $0x38] sm:$0xff]  ;;  %v1701_v25 = vld [vmem:[#allocation7 + $0xb0] sm:$0xff] }
 0x330   : > { %2262 = vmatpush3.msra.mxu0 %v1447_v24  ;;  %2515 = vmatprep.subr.mxu1 %v1478_v28  ;;  %v1718_v24 = vld [vmem:[#allocation7 + $0x138] sm:$0xff] }
 0x331   : > { %2263 = vmatprep.subr.mxu0 %v1462_v26  ;;  %2516 = vmatpush3.msra.mxu1 %v1478_v28  ;;  %v1685_v26 = vld [vmem:[#allocation7 + $0x30] sm:$0xff]  ;;  %v1700_v28 = vld [vmem:[#allocation7 + $0xa8] sm:$0xff] }
 0x332   : > { %2264 = vmatpush3.msra.mxu0 %v1446_v27  ;;  %2520 = vmatprep.subr.mxu1 %v1726_v63  ;;  %v1717_v27 = vld [vmem:[#allocation7 + $0x130] sm:$0xff] }
 0x333   : > { %2289 = vmatprep.subr.mxu0 %v1710_v61 }
 0x3d1   : > { %v2209_v29 = vpop.f32.mrf.mxu0 }
 0x3d2   : > { %v2484_v30 = vpop.f32.mrf.mxu1 }
 0x3d3   : > { %v2210_v31 = vpop.f32.mrf.mxu0 }
 0x3d4   : > { %v2211_v34 = vadd.f32 %v2210_v31, %v2209_v29  ;;  %v1411_v37 = vpop.f32.mrf.mxu1  ;;  %v1684_v29 = vld [vmem:[#allocation7 + $0x28] sm:$0xff]  ;;  %v1699_v31 = vld [vmem:[#allocation7 + $0xa0] sm:$0xff] }
 0x3d5   : > { %v2212_v35 = vpop.f32.mrf.mxu0 }
 0x3d6   : > { %v1337_v60 = vadd.f32 %v2211_v34, %v2002_v33  ;;  %v1715_v34 = vld [vmem:[#allocation7 + $0x120] sm:$0xff] }
 0x3d7   : > { %v2213_v0 = vpop.f32.mrf.mxu0 }
 0x3d8   : > { %v1412_v38 = vadd.f32 %v1411_v37, %v1337_v60  ;;  %v2214_v39 = vadd.f32 %v2213_v0, %v2212_v35  ;;  %v1698_v35 = vld [vmem:[#allocation7 + $0x98] sm:$0xff]  ;;  %v1697_v0 = vld [vmem:[#allocation7 + $0x90] sm:$0xff] }
 0x3d9   : > { %v1682_v60 = vld [vmem:[#allocation7 + $0x18] sm:$0xff] }
 0x3da   : > { %v1422_v40 = vmul.f32 0.70710677, %v1412_v38  ;;  %v1342_v41 = vadd.f32 %v2214_v39, %v2002_v33  ;;  %v1420_v45 = vmul.f32 0.5, %v1412_v38  ;;  %v1683_v33 = vld [vmem:[#allocation7 + $0x20] sm:$0xff]  ;;  %v1714_v37 = vld [vmem:[#allocation7 + $0x118] sm:$0xff]  ;;  %v1681_v38 = vld [vmem:[#allocation7 + $0x10] sm:$0xff] }
 0x3db   : > { %v1713_v39 = vld [vmem:[#allocation7 + $0x110] sm:$0xff] }
 0x3dc   : > { %2618 = verf.f32 %v1422_v40  ;;  %v1417_v42 = vadd.f32 %v2484_v30, %v1342_v41  ;;  %v1716_v30 = vld [vmem:[#allocation7 + $0x128] sm:$0xff] }
 0x3dd   : > { %v1696_v40 = vld [vmem:[#allocation7 + $0x88] sm:$0xff] }
 0x3de   : > { %v1423_v43 = vmul.f32 0.70710677, %v1417_v42  ;;  %v1421_v49 = vmul.f32 0.5, %v1417_v42  ;;  %v1680_v41 = vld [vmem:[#allocation7 + $0x8] sm:$0xff] }
 0x3df   : > { %v1712_v42 = vld [vmem:[#allocation7 + $0x108] sm:$0xff] }
 0x3e0   : > { %2620 = verf.f32 %v1423_v43  ;;  %v1695_v43 = vld [vmem:[#allocation7 + $0x80] sm:$0xff] }
 0x3e9   : > { %v2619_v44 = vpop.eup %2618 }
 0x3ea   : > { %v1426_v46 = vadd.f32 1.0, %v2619_v44  ;;  %v1679_v44 = vld [vmem:[#allocation7] sm:$0xff] }
 0x3ec   : > { %v1428_v47 = vmul.f32 %v1426_v46, %v1420_v45  ;;  %v1711_v45 = vld [vmem:[#allocation7 + $0x100] sm:$0xff] }
 0x3ed   : > { %v2621_v48 = vpop.eup %2620 }
 0x3ee   : > { %v1427_v50 = vadd.f32 1.0, %v2621_v48  ;;  %1565 = vmatprep.mubr.f32.mxu0 %v1428_v47  ;;  %v1434_v52 = vrot.slane %v1428_v47, 7  ;;  %v1439_v54 = vrot.slane %v1428_v47, 1 }
 0x3f0   : > { %v1429_v51 = vmul.f32 %v1427_v50, %v1421_v49  ;;  %v2003_v49 = vld [vmem:[%s3310_s10] ss:$0 sm:$0xff] }
 0x3f2   : > { %v1431_v53 = vrot.slane %v1429_v51, 7  ;;  %v1440_v55 = vrot.slane %v1429_v51, 1 }
 0x3f4   : > { %v1438_v56 = vsel %vm506_vm0, %v1431_v53, %v1434_v52  ;;  %v1441_v57 = vsel %vm512_vm1, %v1439_v54, %v1440_v55  ;;  %v1445_v58 = vsel %vm512_vm1, %v1440_v55, %v1439_v54  ;;  %v1435_v59 = vsel %vm506_vm0, %v1434_v52, %v1431_v53 }
 0x3f5   : > { %1566 = vmatmul.mubr.f32.vlgmr.msra.gmra.mxu0 %v1438_v56  ;;  %2517 = vmatprep.mubr.f32.mxu1 %v1441_v57 }
 0x3f6   : > { %1570 = vmatprep.mubr.f32.mxu0 %v1429_v51  ;;  %2518 = vmatmul.mubr.f32.vlgmr.msra.gmra.mxu1 %v1445_v58 }
 0x3f7   : > { %2290 = vmatpush3.msra.mxu0 %v1694_v62  ;;  %2521 = vmatpush3.msra.mxu1 %v1726_v63 }
 0x3f8   : > { %2291 = vmatprep.subr.mxu0 %v1709_v1  ;;  %2522 = vmatprep.subr.mxu1 %v1725_v3 }
 0x3f9   : > { %1571 = vmatmul.mubr.f32.gmra.mxu0 %v1435_v59  ;;  %2523 = vmatpush3.msra.mxu1 %v1725_v3 }
 0x3fa   : > { %2292 = vmatpush3.msra.mxu0 %v1693_v2  ;;  %2524 = vmatprep.subr.mxu1 %v1724_v6 }
 0x3fb   : > { %2293 = vmatprep.subr.mxu0 %v1708_v4  ;;  %2525 = vmatpush3.msra.mxu1 %v1724_v6 }
 0x3fc   : > { %2294 = vmatpush3.msra.mxu0 %v1692_v5  ;;  %2526 = vmatprep.subr.mxu1 %v1723_v9 }
 0x3fd   : > { %2295 = vmatprep.subr.mxu0 %v1707_v7  ;;  %2527 = vmatpush3.msra.mxu1 %v1723_v9 }
 0x3fe   : > { %2296 = vmatpush3.msra.mxu0 %v1691_v8  ;;  %2528 = vmatprep.subr.mxu1 %v1722_v12 }
 0x3ff   : > { %2297 = vmatprep.subr.mxu0 %v1706_v10  ;;  %2529 = vmatpush3.msra.mxu1 %v1722_v12 }
 0x400   : > { %2298 = vmatpush3.msra.mxu0 %v1690_v11  ;;  %2530 = vmatprep.subr.mxu1 %v1721_v15 }
 0x401   : > { %2299 = vmatprep.subr.mxu0 %v1705_v13  ;;  %2531 = vmatpush3.msra.mxu1 %v1721_v15 }
 0x402   : > { %2300 = vmatpush3.msra.mxu0 %v1689_v14  ;;  %2532 = vmatprep.subr.mxu1 %v1720_v18 }
 0x403   : > { %2301 = vmatprep.subr.mxu0 %v1704_v16  ;;  %2533 = vmatpush3.msra.mxu1 %v1720_v18  ;;  %v2004_v18 = vld [vmem:[%s3312_s12] ss:$0 sm:$0xff] }
 0x404   : > { %2302 = vmatpush3.msra.mxu0 %v1688_v17  ;;  %2534 = vmatprep.subr.mxu1 %v1719_v21 }
 0x405   : > { %2303 = vmatprep.subr.mxu0 %v1703_v19  ;;  %2535 = vmatpush3.msra.mxu1 %v1719_v21 }
 0x406   : > { %2304 = vmatpush3.msra.mxu0 %v1687_v20  ;;  %2536 = vmatprep.subr.mxu1 %v1718_v24 }
 0x407   : > { %2305 = vmatprep.subr.mxu0 %v1702_v22  ;;  %2537 = vmatpush3.msra.mxu1 %v1718_v24 }
 0x408   : > { %2306 = vmatpush3.msra.mxu0 %v1686_v23  ;;  %2538 = vmatprep.subr.mxu1 %v1717_v27 }
 0x409   : > { %2307 = vmatprep.subr.mxu0 %v1701_v25  ;;  %2539 = vmatpush3.msra.mxu1 %v1717_v27 }
 0x40a   : > { %2308 = vmatpush3.msra.mxu0 %v1685_v26  ;;  %2540 = vmatprep.subr.mxu1 %v1716_v30 }
 0x40b   : > { %2309 = vmatprep.subr.mxu0 %v1700_v28  ;;  %2541 = vmatpush3.msra.mxu1 %v1716_v30 }
 0x40c   : > { %2310 = vmatpush3.msra.mxu0 %v1684_v29  ;;  %2542 = vmatprep.subr.mxu1 %v1715_v34 }
 0x40d   : > { %2311 = vmatprep.subr.mxu0 %v1699_v31  ;;  %2543 = vmatpush3.msra.mxu1 %v1715_v34 }
 0x40e   : > { %2312 = vmatpush3.msra.mxu0 %v1683_v33  ;;  %2544 = vmatprep.subr.mxu1 %v1714_v37 }
 0x40f   : > { %2313 = vmatprep.subr.mxu0 %v1698_v35  ;;  %2545 = vmatpush3.msra.mxu1 %v1714_v37 }
 0x410   : > { %2314 = vmatpush3.msra.mxu0 %v1682_v60  ;;  %2546 = vmatprep.subr.mxu1 %v1713_v39 }
 0x411   : > { %2315 = vmatprep.subr.mxu0 %v1697_v0  ;;  %2547 = vmatpush3.msra.mxu1 %v1713_v39 }
 0x412   : > { %2316 = vmatpush3.msra.mxu0 %v1681_v38  ;;  %2548 = vmatprep.subr.mxu1 %v1712_v42 }
 0x413   : > { %2317 = vmatprep.subr.mxu0 %v1696_v40  ;;  %2549 = vmatpush3.msra.mxu1 %v1712_v42 }
 0x414   : > { %2318 = vmatpush3.msra.mxu0 %v1680_v41  ;;  %2550 = vmatprep.subr.mxu1 %v1711_v45 }
 0x415   : > { %2319 = vmatprep.subr.mxu0 %v1695_v43  ;;  %2551 = vmatpush3.msra.mxu1 %v1711_v45 }
 0x416   : > { %2320 = vmatpush3.msra.mxu0 %v1679_v44 }
 0x4b5   : > { %v2265_v46 = vpop.f32.mrf.mxu0 }
 0x4b6   : > { %v2519_v47 = vpop.f32.mrf.mxu1 }
 0x4b7   : > { %v2266_v48 = vpop.f32.mrf.mxu0 }
 0x4b8   : > { %v2267_v50 = vadd.f32 %v2266_v48, %v2265_v46  ;;  %v1642_v53 = vpop.f32.mrf.mxu1 }
 0x4b9   : > { %v2268_v51 = vpop.f32.mrf.mxu0 }
 0x4ba   : > { %v1568_v52 = vadd.f32 %v2267_v50, %v2003_v49 }
 0x4bb   : > { %v2269_v54 = vpop.f32.mrf.mxu0 }
 0x4bc   : > { %v1643_v55 = vadd.f32 %v1642_v53, %v1568_v52  ;;  %v2270_v56 = vadd.f32 %v2269_v54, %v2268_v51 }
 0x4be   : > { %v1651_v57 = vadd.f32 %v1643_v55, %v3259_v32  ;;  %v1573_v58 = vadd.f32 %v2270_v56, %v2003_v49 }
 0x4c0   : > { %v1655_v59 = vmul.f32 0.70710677, %v1651_v57  ;;  %v1648_v61 = vadd.f32 %v2519_v47, %v1573_v58  ;;  %v1653_v2 = vmul.f32 0.5, %v1651_v57 }
 0x4c2   : > { %2622 = verf.f32 %v1655_v59  ;;  %v1652_v62 = vadd.f32 %v1648_v61, %v3262_v36 }
 0x4c4   : > { %v1656_v63 = vmul.f32 0.70710677, %v1652_v62  ;;  %v1654_v6 = vmul.f32 0.5, %v1652_v62 }
 0x4c6   : > { %2624 = verf.f32 %v1656_v63 }
 0x4cf   : > { %v2623_v1 = vpop.eup %2622 }
 0x4d0   : > { %v1659_v3 = vadd.f32 1.0, %v2623_v1 }
 0x4d2   : > { %v1661_v4 = vmul.f32 %v1659_v3, %v1653_v2 }
 0x4d3   : > { %v2625_v5 = vpop.eup %2624 }
 0x4d4   : > { %v1660_v7 = vadd.f32 1.0, %v2625_v5  ;;  %1798 = vmatprep.mubr.f32.mxu0 %v1661_v4  ;;  %v1667_v9 = vrot.slane %v1661_v4, 7  ;;  %v1672_v32 = vrot.slane %v1661_v4, 1 }
 0x4d6   : > { %v1662_v8 = vmul.f32 %v1660_v7, %v1654_v6 }
 0x4d8   : > { %v1664_v10 = vrot.slane %v1662_v8, 7  ;;  %v1673_v11 = vrot.slane %v1662_v8, 1 }
 0x4da   : > { %v1671_v12 = vsel %vm506_vm0, %v1664_v10, %v1667_v9  ;;  %v1674_v36 = vsel %vm512_vm1, %v1672_v32, %v1673_v11  ;;  %v1678_v13 = vsel %vm512_vm1, %v1673_v11, %v1672_v32  ;;  %v1668_v14 = vsel %vm506_vm0, %v1667_v9, %v1664_v10 }
 0x4db   : > { %1799 = vmatmul.mubr.f32.vlgmr.msra.gmra.mxu0 %v1671_v12  ;;  %2552 = vmatprep.mubr.f32.mxu1 %v1674_v36 }
 0x4dc   : > { %1803 = vmatprep.mubr.f32.mxu0 %v1662_v8  ;;  %2553 = vmatmul.mubr.f32.vlgmr.msra.gmra.mxu1 %v1678_v13 }
 0x4df   : > { %1804 = vmatmul.mubr.f32.gmra.mxu0 %v1668_v14 }
 0x59b   : > { %v2321_v15 = vpop.f32.mrf.mxu0 }
 0x59c   : > { %v2554_v16 = vpop.f32.mrf.mxu1 }
 0x59d   : > { %v2322_v17 = vpop.f32.mrf.mxu0 }
 0x59e   : > { %v2323_v19 = vadd.f32 %v2322_v17, %v2321_v15  ;;  %v1875_v22 = vpop.f32.mrf.mxu1 }
 0x59f   : > { %v2324_v20 = vpop.f32.mrf.mxu0 }
 0x5a0   : > { %v1801_v21 = vadd.f32 %v2323_v19, %v2004_v18 }
 0x5a1   : > { %v2325_v23 = vpop.f32.mrf.mxu0 }
 0x5a2   : > { %v1876_v24 = vadd.f32 %v1875_v22, %v1801_v21  ;;  %v2326_v25 = vadd.f32 %v2325_v23, %v2324_v20 }
 0x5a4   : > { %1884 = vst [vmem:[%s499_s18] sm:$0xff] %v1876_v24  ;;  %v1806_v26 = vadd.f32 %v2326_v25, %v2004_v18 }
 0x5a6   : > { %v1881_v27 = vadd.f32 %v2554_v16, %v1806_v26 }
 0x5a8   : > { %1885 = vst [vmem:[%s499_s18 + $0x8] sm:$0xff] %v1881_v27 }
 0x5a9 PF: > { %s26_s25 = sadd.s32 1, %s2748_s25  }
 0x5aa   : > { %p23_p3 = scmp.ge.s32.totalorder %s26_s25, 4  }
 0x5ac   :  { %25 = sbr.rel (!%p23_p3) target bundleno = 3 (0x3), region = 119 }
 0x5b1   :  { %1907 = vsyncpa [#allocation3], 1 }
 0x5b2   :  { %1909 = vsyncpa [#allocation3 + $0x1], 1 }
 0x5b3   :  { %1910 = vsyncpa [#allocation5], 1 }
 0x5b4   :  { %1911 = vsyncpa [#allocation8], 1 }

</bundles_post_ra>
